<compile_context>
chip_gen: v7x
topology: tpu7x:2x2x1
jax: 0.10.0
libtpu: 0.0.40
codegen_flags: <defaults>
</compile_context>

<pallas_src>
import functools
import math

import jax
import jax.numpy as jnp
from jax.experimental import pallas as pl
from jax.experimental.pallas import tpu as pltpu


def _layer_norm_rows(x2d, gamma, beta, eps=1e-5):
    """LayerNorm over the last dim of a (rows, D) tile. gamma/beta are (1, D)."""
    mu = jnp.mean(x2d, axis=-1, keepdims=True)
    xc = x2d - mu
    var = jnp.mean(xc * xc, axis=-1, keepdims=True)
    inv = jax.lax.rsqrt(var + eps)
    return xc * inv * gamma + beta


def _self_attention_kernel(
    x_ref, mask_ref,
    w_qkv_ref, b_qkv_ref, w_o_ref, b_o_ref,
    g_mha_ref, be_mha_ref,
    w_fc1_ref, b_fc1_ref, w_fc2_ref, b_fc2_ref,
    g_fcn_ref, be_fcn_ref,
    out_ref,
    *, num_heads, d_k,
):
    bt, s, d = x_ref.shape
    x = x_ref[...].astype(jnp.float32)              # (BT, S, D)
    x2 = x.reshape(bt * s, d)                       # sublane-dense rows for matmuls

    # ---- fused QKV projection: one wide matmul instead of three narrow ones.
    qkv = jnp.dot(x2, w_qkv_ref[...], preferred_element_type=jnp.float32) + b_qkv_ref[...]
    q = qkv[:, :d].reshape(bt, s, d)
    k = qkv[:, d:2 * d].reshape(bt, s, d)
    v = qkv[:, 2 * d:].reshape(bt, s, d)

    # key padding mask: True -> masked_fill(-1e9), broadcast over heads & queries.
    neg_big = jnp.float32(-1e9)
    key_masked = jnp.broadcast_to(mask_ref[...] != 0, (bt, s, s))   # (BT, Sq, Sk)

    inv_sqrt_dk = 1.0 / math.sqrt(d_k)

    # ---- per-head scaled dot-product attention (static unroll over heads).
    ctx_heads = []
    for h in range(num_heads):
        lo = h * d_k
        qh = q[:, :, lo:lo + d_k]                   # (BT, S, dk)
        kh = k[:, :, lo:lo + d_k]
        vh = v[:, :, lo:lo + d_k]
        scores = jnp.einsum("bqd,bkd->bqk", qh, kh,
                            preferred_element_type=jnp.float32) * inv_sqrt_dk
        scores = jnp.where(key_masked, neg_big, scores)
        scores = scores - jnp.max(scores, axis=-1, keepdims=True)
        e = jnp.exp(scores)
        p_attn = e / jnp.sum(e, axis=-1, keepdims=True)
        ctx_heads.append(jnp.einsum("bqk,bkd->bqd", p_attn, vh,
                                    preferred_element_type=jnp.float32))
    ctx = jnp.concatenate(ctx_heads, axis=-1).reshape(bt * s, d)

    # ---- output projection + residual + LayerNorm.
    mha = jnp.dot(ctx, w_o_ref[...], preferred_element_type=jnp.float32) + b_o_ref[...]
    y = _layer_norm_rows(x2 + mha, g_mha_ref[...], be_mha_ref[...])

    # ---- FFN (Linear -> ReLU -> Linear) + residual + LayerNorm.
    h1 = jnp.dot(y, w_fc1_ref[...], preferred_element_type=jnp.float32) + b_fc1_ref[...]
    h1 = jnp.maximum(h1, 0.0)
    ffn = jnp.dot(h1, w_fc2_ref[...], preferred_element_type=jnp.float32) + b_fc2_ref[...]
    out = _layer_norm_rows(y + ffn, g_fcn_ref[...], be_fcn_ref[...])

    out_ref[...] = out.reshape(bt, s, d).astype(out_ref.dtype)


def self_attention_forward(x, x_mask, params, num_heads, *, block_b=None):
    """x: (B, S, D) float32, x_mask: (B, S) bool (True = padded/masked key)."""
    B, S, D = x.shape
    assert D % num_heads == 0
    d_k = D // num_heads

    if block_b is None:
        # Block as many batch rows per grid step as is reasonable (amortizes
        # per-step overhead, makes matmul M large); keep rows-per-step bounded.
        max_rows = 512
        cand = [bt for bt in range(1, B + 1) if B % bt == 0 and bt * S <= max(max_rows, S)]
        block_b = max(cand) if cand else B
    assert B % block_b == 0, f"block_b={block_b} must divide B={B}"
    grid = (B // block_b,)

    # Pack QKV weights -> one (D, 3D) matmul inside the kernel.
    w_qkv = jnp.concatenate([params["w_q"], params["w_k"], params["w_v"]], axis=1)
    b_qkv = jnp.concatenate([params["b_q"], params["b_k"], params["b_v"]], axis=1)

    # Mask reshaped to (B, 1, S) so its last two dims are always full-extent.
    mask3 = x_mask.astype(jnp.int32).reshape(B, 1, S)

    weights = [
        w_qkv, b_qkv, params["w_o"], params["b_o"],
        params["g_mha"], params["be_mha"],
        params["w_fc1"], params["b_fc1"], params["w_fc2"], params["b_fc2"],
        params["g_fcn"], params["be_fcn"],
    ]

    in_specs = (
        [pl.BlockSpec((block_b, S, D), lambda b: (b, 0, 0)),
         pl.BlockSpec((block_b, 1, S), lambda b: (b, 0, 0))]
        + [pl.BlockSpec(w.shape, lambda b: (0, 0)) for w in weights]
    )

    kernel = functools.partial(_self_attention_kernel, num_heads=num_heads, d_k=d_k)

    return pl.pallas_call(
        kernel,
        out_shape=jax.ShapeDtypeStruct((B, S, D), x.dtype),
        grid=grid,
        in_specs=in_specs,
        out_specs=pl.BlockSpec((block_b, S, D), lambda b: (b, 0, 0)),
        compiler_params=pltpu.CompilerParams(dimension_semantics=("parallel",)),
    )(x, mask3, *weights)


# ---------------- pure-JAX reference (mirrors the PyTorch forward) ----------------
def _ref_layer_norm(x, gamma, beta, eps=1e-5):
    mu = jnp.mean(x, axis=-1, keepdims=True)
    var = jnp.mean((x - mu) ** 2, axis=-1, keepdims=True)
    return (x - mu) * jax.lax.rsqrt(var + eps) * gamma + beta


def self_attention_ref(x, x_mask, params, num_heads):
    B, S, D = x.shape
    d_k = D // num_heads
    q = x @ params["w_q"] + params["b_q"]
    k = x @ params["w_k"] + params["b_k"]
    v = x @ params["w_v"] + params["b_v"]

    def heads(t):
        return t.reshape(B, S, num_heads, d_k).transpose(0, 2, 1, 3)

    qh, kh, vh = heads(q), heads(k), heads(v)
    scores = jnp.einsum("bhqd,bhkd->bhqk", qh, kh) / math.sqrt(d_k)
    scores = jnp.where(x_mask[:, None, None, :], -1e9, scores)
    p_attn = jax.nn.softmax(scores, axis=-1)
    ctx = jnp.einsum("bhqk,bhkd->bhqd", p_attn, vh)
    ctx = ctx.transpose(0, 2, 1, 3).reshape(B, S, D)
    mha = ctx @ params["w_o"] + params["b_o"]
    y = _ref_layer_norm(x + mha, params["g_mha"], params["be_mha"])
    h1 = jax.nn.relu(y @ params["w_fc1"] + params["b_fc1"])
    ffn = h1 @ params["w_fc2"] + params["b_fc2"]
    return _ref_layer_norm(y + ffn, params["g_fcn"], params["be_fcn"])


# ---------------- deterministic parameter construction ----------------
def make_params(key, dim, num_heads):
    hidden = 4 * dim
    ks = jax.random.split(key, 10)

    def linear(k, d_in, d_out):
        kw, kb = jax.random.split(k)
        w = jax.random.normal(kw, (d_in, d_out), jnp.float32) / math.sqrt(d_in)
        b = 0.02 * jax.random.normal(kb, (1, d_out), jnp.float32)
        return w, b

    w_q, b_q = linear(ks[0], dim, dim)
    w_k, b_k = linear(ks[1], dim, dim)
    w_v, b_v = linear(ks[2], dim, dim)
    w_o, b_o = linear(ks[3], dim, dim)
    w_fc1, b_fc1 = linear(ks[4], dim, hidden)
    w_fc2, b_fc2 = linear(ks[5], hidden, dim)
    g_mha = 1.0 + 0.1 * jax.random.normal(ks[6], (1, dim), jnp.float32)
    be_mha = 0.05 * jax.random.normal(ks[7], (1, dim), jnp.float32)
    g_fcn = 1.0 + 0.1 * jax.random.normal(ks[8], (1, dim), jnp.float32)
    be_fcn = 0.05 * jax.random.normal(ks[9], (1, dim), jnp.float32)
    return dict(
        w_q=w_q, b_q=b_q, w_k=w_k, b_k=b_k, w_v=w_v, b_v=b_v,
        w_o=w_o, b_o=b_o,
        g_mha=g_mha, be_mha=be_mha,
        w_fc1=w_fc1, b_fc1=b_fc1, w_fc2=w_fc2, b_fc2=b_fc2,
        g_fcn=g_fcn, be_fcn=be_fcn,
    )


if __name__ == "__main__":
    B, S, dim, num_heads = 4, 16, 32, 4

    key = jax.random.PRNGKey(0)
    kx, km, kp = jax.random.split(key, 3)

    x = jax.random.normal(kx, (B, S, dim), jnp.float32)
    # True = padded position (masked_fill with -1e9); keep position 0 unmasked.
    x_mask = jax.random.uniform(km, (B, S)) < 0.25
    x_mask = x_mask.at[:, 0].set(False)
    params = make_params(kp, dim, num_heads)

    out = self_attention_forward(x, x_mask, params, num_heads, block_b=2)
    out = jax.block_until_ready(out)

    ref = self_attention_ref(x, x_mask, params, num_heads)
    assert out.shape == (B, S, dim)
    # Tolerance accounts for possible MXU precision-path differences between the
    # Pallas kernel and the XLA reference (both f32 inputs, post-LayerNorm O(1)).
    assert jnp.allclose(out, ref, atol=2e-2, rtol=2e-2), (
        f"max abs err {jnp.max(jnp.abs(out - ref))}"
    )
    print("KERNEL_OK")
</pallas_src>

<mosaic_0001>
module attributes {stable_mosaic.version = 11 : i64} {
  func.func @_self_attention_kernel(%arg0: i32, %arg1: memref<2x16x32xf32, #tpu.memory_space<vmem>>, %arg2: memref<2x1x16xi32, #tpu.memory_space<vmem>>, %arg3: memref<32x96xf32, #tpu.memory_space<vmem>>, %arg4: memref<1x96xf32, #tpu.memory_space<vmem>>, %arg5: memref<32x32xf32, #tpu.memory_space<vmem>>, %arg6: memref<1x32xf32, #tpu.memory_space<vmem>>, %arg7: memref<1x32xf32, #tpu.memory_space<vmem>>, %arg8: memref<1x32xf32, #tpu.memory_space<vmem>>, %arg9: memref<32x128xf32, #tpu.memory_space<vmem>>, %arg10: memref<1x128xf32, #tpu.memory_space<vmem>>, %arg11: memref<128x32xf32, #tpu.memory_space<vmem>>, %arg12: memref<1x32xf32, #tpu.memory_space<vmem>>, %arg13: memref<1x32xf32, #tpu.memory_space<vmem>>, %arg14: memref<1x32xf32, #tpu.memory_space<vmem>>, %arg15: memref<2x16x32xf32, #tpu.memory_space<vmem>>) attributes {dimension_semantics = [#tpu.dimension_semantics<parallel>], iteration_bounds = array<i64: 2>, scalar_prefetch = 0 : i64, scratch_operands = 0 : i64, tpu.core_type = #tpu.core_type<tc>, window_params = [{transform_indices = @transform_0, window_bounds = array<i64: 2, 16, 32>}, {transform_indices = @transform_1, window_bounds = array<i64: 2, 1, 16>}, {pipeline_mode = #tpu.pipeline_mode<synchronous>, transform_indices = @transform_2, window_bounds = array<i64: 32, 96>}, {pipeline_mode = #tpu.pipeline_mode<synchronous>, transform_indices = @transform_3, window_bounds = array<i64: 1, 96>}, {pipeline_mode = #tpu.pipeline_mode<synchronous>, transform_indices = @transform_4, window_bounds = array<i64: 32, 32>}, {pipeline_mode = #tpu.pipeline_mode<synchronous>, transform_indices = @transform_5, window_bounds = array<i64: 1, 32>}, {pipeline_mode = #tpu.pipeline_mode<synchronous>, transform_indices = @transform_6, window_bounds = array<i64: 1, 32>}, {pipeline_mode = #tpu.pipeline_mode<synchronous>, transform_indices = @transform_7, window_bounds = array<i64: 1, 32>}, {pipeline_mode = #tpu.pipeline_mode<synchronous>, transform_indices = @transform_8, window_bounds = array<i64: 32, 128>}, {pipeline_mode = #tpu.pipeline_mode<synchronous>, transform_indices = @transform_9, window_bounds = array<i64: 1, 128>}, {pipeline_mode = #tpu.pipeline_mode<synchronous>, transform_indices = @transform_10, window_bounds = array<i64: 128, 32>}, {pipeline_mode = #tpu.pipeline_mode<synchronous>, transform_indices = @transform_11, window_bounds = array<i64: 1, 32>}, {pipeline_mode = #tpu.pipeline_mode<synchronous>, transform_indices = @transform_12, window_bounds = array<i64: 1, 32>}, {pipeline_mode = #tpu.pipeline_mode<synchronous>, transform_indices = @transform_13, window_bounds = array<i64: 1, 32>}, {transform_indices = @transform_14, window_bounds = array<i64: 2, 16, 32>}]} {
    %c0 = arith.constant 0 : index
    %c0_0 = arith.constant 0 : index
    %c0_1 = arith.constant 0 : index
    %0 = vector.load %arg1[%c0, %c0_0, %c0_1] : memref<2x16x32xf32, #tpu.memory_space<vmem>>, vector<2x16x32xf32>
    %1 = vector.shape_cast %0 : vector<2x16x32xf32> to vector<32x32xf32>
    %c0_2 = arith.constant 0 : index
    %c0_3 = arith.constant 0 : index
    %2 = vector.load %arg3[%c0_2, %c0_3] : memref<32x96xf32, #tpu.memory_space<vmem>>, vector<32x96xf32>
    %cst = arith.constant dense<0.000000e+00> : vector<32x96xf32>
    %3 = tpu.matmul %1, %2, %cst {dimension_numbers = #tpu.dot_dimension_numbers<[1], [0], [0], [1], [0, 0, 1, 1], [], []>} : vector<32x32xf32>, vector<32x96xf32>, vector<32x96xf32> -> vector<32x96xf32>
    %c0_4 = arith.constant 0 : index
    %c0_5 = arith.constant 0 : index
    %4 = vector.load %arg4[%c0_4, %c0_5] : memref<1x96xf32, #tpu.memory_space<vmem>>, vector<1x96xf32>
    %5 = vector.broadcast %4 : vector<1x96xf32> to vector<32x96xf32>
    %6 = arith.addf %3, %5 : vector<32x96xf32>
    %7 = vector.extract_strided_slice %6 {offsets = [0, 0], sizes = [32, 32], strides = [1, 1]} : vector<32x96xf32> to vector<32x32xf32>
    %8 = vector.shape_cast %7 : vector<32x32xf32> to vector<2x16x32xf32>
    %9 = vector.extract_strided_slice %6 {offsets = [0, 32], sizes = [32, 32], strides = [1, 1]} : vector<32x96xf32> to vector<32x32xf32>
    %10 = vector.shape_cast %9 : vector<32x32xf32> to vector<2x16x32xf32>
    %11 = vector.extract_strided_slice %6 {offsets = [0, 64], sizes = [32, 32], strides = [1, 1]} : vector<32x96xf32> to vector<32x32xf32>
    %12 = vector.shape_cast %11 : vector<32x32xf32> to vector<2x16x32xf32>
    %c0_6 = arith.constant 0 : index
    %c0_7 = arith.constant 0 : index
    %c0_8 = arith.constant 0 : index
    %13 = vector.load %arg2[%c0_6, %c0_7, %c0_8] : memref<2x1x16xi32, #tpu.memory_space<vmem>>, vector<2x1x16xi32>
    %c0_i32 = arith.constant 0 : i32
    %14 = vector.broadcast %c0_i32 : i32 to vector<2x1x16xi32>
    %15 = arith.cmpi ne, %13, %14 : vector<2x1x16xi32>
    %16 = vector.shape_cast %15 : vector<2x1x16xi1> to vector<2x1x16xi1>
    %17 = vector.broadcast %16 : vector<2x1x16xi1> to vector<2x16x16xi1>
    %18 = vector.extract_strided_slice %8 {offsets = [0, 0, 0], sizes = [2, 16, 8], strides = [1, 1, 1]} : vector<2x16x32xf32> to vector<2x16x8xf32>
    %19 = vector.extract_strided_slice %10 {offsets = [0, 0, 0], sizes = [2, 16, 8], strides = [1, 1, 1]} : vector<2x16x32xf32> to vector<2x16x8xf32>
    %20 = vector.extract_strided_slice %12 {offsets = [0, 0, 0], sizes = [2, 16, 8], strides = [1, 1, 1]} : vector<2x16x32xf32> to vector<2x16x8xf32>
    "tpu.trace_start"() <{level = 10 : i32, message = "bqd,bkd->bqk"}> : () -> ()
    %cst_9 = arith.constant dense<0.000000e+00> : vector<2x16x16xf32>
    %21 = tpu.matmul %18, %19, %cst_9 {dimension_numbers = #tpu.dot_dimension_numbers<[2], [2], [1], [1], [0, 0, 0, 1, 1, 1], [0], [0]>} : vector<2x16x8xf32>, vector<2x16x8xf32>, vector<2x16x16xf32> -> vector<2x16x16xf32>
    "tpu.trace_stop"() : () -> ()
    %cst_10 = arith.constant 0.353553385 : f32
    %22 = vector.broadcast %cst_10 : f32 to vector<2x16x16xf32>
    %23 = arith.mulf %21, %22 : vector<2x16x16xf32>
    %cst_11 = arith.constant -1.000000e+09 : f32
    %24 = vector.broadcast %cst_11 : f32 to vector<2x16x16xf32>
    %25 = arith.select %17, %24, %23 : vector<2x16x16xi1>, vector<2x16x16xf32>
    %cst_12 = arith.constant dense<0xFF800000> : vector<2x16xf32>
    %26 = vector.multi_reduction <maximumf>, %25, %cst_12 [2] : vector<2x16x16xf32> to vector<2x16xf32>
    %27 = vector.shape_cast %26 : vector<2x16xf32> to vector<2x16x1xf32>
    %28 = vector.broadcast %27 : vector<2x16x1xf32> to vector<2x16x16xf32>
    %29 = arith.subf %25, %28 : vector<2x16x16xf32>
    %30 = math.exp %29 : vector<2x16x16xf32>
    %cst_13 = arith.constant dense<0.000000e+00> : vector<2x16xf32>
    %31 = vector.multi_reduction <add>, %30, %cst_13 [2] : vector<2x16x16xf32> to vector<2x16xf32>
    %32 = vector.shape_cast %31 : vector<2x16xf32> to vector<2x16x1xf32>
    %33 = vector.broadcast %32 : vector<2x16x1xf32> to vector<2x16x16xf32>
    %34 = arith.divf %30, %33 : vector<2x16x16xf32>
    "tpu.trace_start"() <{level = 10 : i32, message = "bqk,bkd->bqd"}> : () -> ()
    %cst_14 = arith.constant dense<0.000000e+00> : vector<2x16x8xf32>
    %35 = tpu.matmul %34, %20, %cst_14 {dimension_numbers = #tpu.dot_dimension_numbers<[2], [1], [1], [2], [0, 0, 0, 1, 1, 2], [0], [0]>} : vector<2x16x16xf32>, vector<2x16x8xf32>, vector<2x16x8xf32> -> vector<2x16x8xf32>
    "tpu.trace_stop"() : () -> ()
    %36 = vector.extract_strided_slice %8 {offsets = [0, 0, 8], sizes = [2, 16, 8], strides = [1, 1, 1]} : vector<2x16x32xf32> to vector<2x16x8xf32>
    %37 = vector.extract_strided_slice %10 {offsets = [0, 0, 8], sizes = [2, 16, 8], strides = [1, 1, 1]} : vector<2x16x32xf32> to vector<2x16x8xf32>
    %38 = vector.extract_strided_slice %12 {offsets = [0, 0, 8], sizes = [2, 16, 8], strides = [1, 1, 1]} : vector<2x16x32xf32> to vector<2x16x8xf32>
    "tpu.trace_start"() <{level = 10 : i32, message = "bqd,bkd->bqk"}> : () -> ()
    %cst_15 = arith.constant dense<0.000000e+00> : vector<2x16x16xf32>
    %39 = tpu.matmul %36, %37, %cst_15 {dimension_numbers = #tpu.dot_dimension_numbers<[2], [2], [1], [1], [0, 0, 0, 1, 1, 1], [0], [0]>} : vector<2x16x8xf32>, vector<2x16x8xf32>, vector<2x16x16xf32> -> vector<2x16x16xf32>
    "tpu.trace_stop"() : () -> ()
    %cst_16 = arith.constant 0.353553385 : f32
    %40 = vector.broadcast %cst_16 : f32 to vector<2x16x16xf32>
    %41 = arith.mulf %39, %40 : vector<2x16x16xf32>
    %cst_17 = arith.constant -1.000000e+09 : f32
    %42 = vector.broadcast %cst_17 : f32 to vector<2x16x16xf32>
    %43 = arith.select %17, %42, %41 : vector<2x16x16xi1>, vector<2x16x16xf32>
    %cst_18 = arith.constant dense<0xFF800000> : vector<2x16xf32>
    %44 = vector.multi_reduction <maximumf>, %43, %cst_18 [2] : vector<2x16x16xf32> to vector<2x16xf32>
    %45 = vector.shape_cast %44 : vector<2x16xf32> to vector<2x16x1xf32>
    %46 = vector.broadcast %45 : vector<2x16x1xf32> to vector<2x16x16xf32>
    %47 = arith.subf %43, %46 : vector<2x16x16xf32>
    %48 = math.exp %47 : vector<2x16x16xf32>
    %cst_19 = arith.constant dense<0.000000e+00> : vector<2x16xf32>
    %49 = vector.multi_reduction <add>, %48, %cst_19 [2] : vector<2x16x16xf32> to vector<2x16xf32>
    %50 = vector.shape_cast %49 : vector<2x16xf32> to vector<2x16x1xf32>
    %51 = vector.broadcast %50 : vector<2x16x1xf32> to vector<2x16x16xf32>
    %52 = arith.divf %48, %51 : vector<2x16x16xf32>
    "tpu.trace_start"() <{level = 10 : i32, message = "bqk,bkd->bqd"}> : () -> ()
    %cst_20 = arith.constant dense<0.000000e+00> : vector<2x16x8xf32>
    %53 = tpu.matmul %52, %38, %cst_20 {dimension_numbers = #tpu.dot_dimension_numbers<[2], [1], [1], [2], [0, 0, 0, 1, 1, 2], [0], [0]>} : vector<2x16x16xf32>, vector<2x16x8xf32>, vector<2x16x8xf32> -> vector<2x16x8xf32>
    "tpu.trace_stop"() : () -> ()
    %54 = vector.extract_strided_slice %8 {offsets = [0, 0, 16], sizes = [2, 16, 8], strides = [1, 1, 1]} : vector<2x16x32xf32> to vector<2x16x8xf32>
    %55 = vector.extract_strided_slice %10 {offsets = [0, 0, 16], sizes = [2, 16, 8], strides = [1, 1, 1]} : vector<2x16x32xf32> to vector<2x16x8xf32>
    %56 = vector.extract_strided_slice %12 {offsets = [0, 0, 16], sizes = [2, 16, 8], strides = [1, 1, 1]} : vector<2x16x32xf32> to vector<2x16x8xf32>
    "tpu.trace_start"() <{level = 10 : i32, message = "bqd,bkd->bqk"}> : () -> ()
    %cst_21 = arith.constant dense<0.000000e+00> : vector<2x16x16xf32>
    %57 = tpu.matmul %54, %55, %cst_21 {dimension_numbers = #tpu.dot_dimension_numbers<[2], [2], [1], [1], [0, 0, 0, 1, 1, 1], [0], [0]>} : vector<2x16x8xf32>, vector<2x16x8xf32>, vector<2x16x16xf32> -> vector<2x16x16xf32>
    "tpu.trace_stop"() : () -> ()
    %cst_22 = arith.constant 0.353553385 : f32
    %58 = vector.broadcast %cst_22 : f32 to vector<2x16x16xf32>
    %59 = arith.mulf %57, %58 : vector<2x16x16xf32>
    %cst_23 = arith.constant -1.000000e+09 : f32
    %60 = vector.broadcast %cst_23 : f32 to vector<2x16x16xf32>
    %61 = arith.select %17, %60, %59 : vector<2x16x16xi1>, vector<2x16x16xf32>
    %cst_24 = arith.constant dense<0xFF800000> : vector<2x16xf32>
    %62 = vector.multi_reduction <maximumf>, %61, %cst_24 [2] : vector<2x16x16xf32> to vector<2x16xf32>
    %63 = vector.shape_cast %62 : vector<2x16xf32> to vector<2x16x1xf32>
    %64 = vector.broadcast %63 : vector<2x16x1xf32> to vector<2x16x16xf32>
    %65 = arith.subf %61, %64 : vector<2x16x16xf32>
    %66 = math.exp %65 : vector<2x16x16xf32>
    %cst_25 = arith.constant dense<0.000000e+00> : vector<2x16xf32>
    %67 = vector.multi_reduction <add>, %66, %cst_25 [2] : vector<2x16x16xf32> to vector<2x16xf32>
    %68 = vector.shape_cast %67 : vector<2x16xf32> to vector<2x16x1xf32>
    %69 = vector.broadcast %68 : vector<2x16x1xf32> to vector<2x16x16xf32>
    %70 = arith.divf %66, %69 : vector<2x16x16xf32>
    "tpu.trace_start"() <{level = 10 : i32, message = "bqk,bkd->bqd"}> : () -> ()
    %cst_26 = arith.constant dense<0.000000e+00> : vector<2x16x8xf32>
    %71 = tpu.matmul %70, %56, %cst_26 {dimension_numbers = #tpu.dot_dimension_numbers<[2], [1], [1], [2], [0, 0, 0, 1, 1, 2], [0], [0]>} : vector<2x16x16xf32>, vector<2x16x8xf32>, vector<2x16x8xf32> -> vector<2x16x8xf32>
    "tpu.trace_stop"() : () -> ()
    %72 = vector.extract_strided_slice %8 {offsets = [0, 0, 24], sizes = [2, 16, 8], strides = [1, 1, 1]} : vector<2x16x32xf32> to vector<2x16x8xf32>
    %73 = vector.extract_strided_slice %10 {offsets = [0, 0, 24], sizes = [2, 16, 8], strides = [1, 1, 1]} : vector<2x16x32xf32> to vector<2x16x8xf32>
    %74 = vector.extract_strided_slice %12 {offsets = [0, 0, 24], sizes = [2, 16, 8], strides = [1, 1, 1]} : vector<2x16x32xf32> to vector<2x16x8xf32>
    "tpu.trace_start"() <{level = 10 : i32, message = "bqd,bkd->bqk"}> : () -> ()
    %cst_27 = arith.constant dense<0.000000e+00> : vector<2x16x16xf32>
    %75 = tpu.matmul %72, %73, %cst_27 {dimension_numbers = #tpu.dot_dimension_numbers<[2], [2], [1], [1], [0, 0, 0, 1, 1, 1], [0], [0]>} : vector<2x16x8xf32>, vector<2x16x8xf32>, vector<2x16x16xf32> -> vector<2x16x16xf32>
    "tpu.trace_stop"() : () -> ()
    %cst_28 = arith.constant 0.353553385 : f32
    %76 = vector.broadcast %cst_28 : f32 to vector<2x16x16xf32>
    %77 = arith.mulf %75, %76 : vector<2x16x16xf32>
    %cst_29 = arith.constant -1.000000e+09 : f32
    %78 = vector.broadcast %cst_29 : f32 to vector<2x16x16xf32>
    %79 = arith.select %17, %78, %77 : vector<2x16x16xi1>, vector<2x16x16xf32>
    %cst_30 = arith.constant dense<0xFF800000> : vector<2x16xf32>
    %80 = vector.multi_reduction <maximumf>, %79, %cst_30 [2] : vector<2x16x16xf32> to vector<2x16xf32>
    %81 = vector.shape_cast %80 : vector<2x16xf32> to vector<2x16x1xf32>
    %82 = vector.broadcast %81 : vector<2x16x1xf32> to vector<2x16x16xf32>
    %83 = arith.subf %79, %82 : vector<2x16x16xf32>
    %84 = math.exp %83 : vector<2x16x16xf32>
    %cst_31 = arith.constant dense<0.000000e+00> : vector<2x16xf32>
    %85 = vector.multi_reduction <add>, %84, %cst_31 [2] : vector<2x16x16xf32> to vector<2x16xf32>
    %86 = vector.shape_cast %85 : vector<2x16xf32> to vector<2x16x1xf32>
    %87 = vector.broadcast %86 : vector<2x16x1xf32> to vector<2x16x16xf32>
    %88 = arith.divf %84, %87 : vector<2x16x16xf32>
    "tpu.trace_start"() <{level = 10 : i32, message = "bqk,bkd->bqd"}> : () -> ()
    %cst_32 = arith.constant dense<0.000000e+00> : vector<2x16x8xf32>
    %89 = tpu.matmul %88, %74, %cst_32 {dimension_numbers = #tpu.dot_dimension_numbers<[2], [1], [1], [2], [0, 0, 0, 1, 1, 2], [0], [0]>} : vector<2x16x16xf32>, vector<2x16x8xf32>, vector<2x16x8xf32> -> vector<2x16x8xf32>
    "tpu.trace_stop"() : () -> ()
    %90 = tpu.concatenate %35, %53, %71, %89 in 2 : vector<2x16x8xf32>, vector<2x16x8xf32>, vector<2x16x8xf32>, vector<2x16x8xf32> -> vector<2x16x32xf32>
    %91 = vector.shape_cast %90 : vector<2x16x32xf32> to vector<32x32xf32>
    %c0_33 = arith.constant 0 : index
    %c0_34 = arith.constant 0 : index
    %92 = vector.load %arg5[%c0_33, %c0_34] : memref<32x32xf32, #tpu.memory_space<vmem>>, vector<32x32xf32>
    %cst_35 = arith.constant dense<0.000000e+00> : vector<32x32xf32>
    %93 = tpu.matmul %91, %92, %cst_35 {dimension_numbers = #tpu.dot_dimension_numbers<[1], [0], [0], [1], [0, 0, 1, 1], [], []>} : vector<32x32xf32>, vector<32x32xf32>, vector<32x32xf32> -> vector<32x32xf32>
    %c0_36 = arith.constant 0 : index
    %c0_37 = arith.constant 0 : index
    %94 = vector.load %arg6[%c0_36, %c0_37] : memref<1x32xf32, #tpu.memory_space<vmem>>, vector<1x32xf32>
    %95 = vector.broadcast %94 : vector<1x32xf32> to vector<32x32xf32>
    %96 = arith.addf %93, %95 : vector<32x32xf32>
    %97 = arith.addf %1, %96 : vector<32x32xf32>
    %c0_38 = arith.constant 0 : index
    %c0_39 = arith.constant 0 : index
    %98 = vector.load %arg7[%c0_38, %c0_39] : memref<1x32xf32, #tpu.memory_space<vmem>>, vector<1x32xf32>
    %c0_40 = arith.constant 0 : index
    %c0_41 = arith.constant 0 : index
    %99 = vector.load %arg8[%c0_40, %c0_41] : memref<1x32xf32, #tpu.memory_space<vmem>>, vector<1x32xf32>
    %cst_42 = arith.constant dense<0.000000e+00> : vector<32xf32>
    %100 = vector.multi_reduction <add>, %97, %cst_42 [1] : vector<32x32xf32> to vector<32xf32>
    %101 = vector.shape_cast %100 : vector<32xf32> to vector<32x1xf32>
    %cst_43 = arith.constant 3.200000e+01 : f32
    %102 = vector.broadcast %cst_43 : f32 to vector<32x1xf32>
    %103 = arith.divf %101, %102 : vector<32x1xf32>
    %104 = vector.broadcast %103 : vector<32x1xf32> to vector<32x32xf32>
    %105 = arith.subf %97, %104 : vector<32x32xf32>
    %106 = arith.mulf %105, %105 : vector<32x32xf32>
    %cst_44 = arith.constant dense<0.000000e+00> : vector<32xf32>
    %107 = vector.multi_reduction <add>, %106, %cst_44 [1] : vector<32x32xf32> to vector<32xf32>
    %108 = vector.shape_cast %107 : vector<32xf32> to vector<32x1xf32>
    %cst_45 = arith.constant 3.200000e+01 : f32
    %109 = vector.broadcast %cst_45 : f32 to vector<32x1xf32>
    %110 = arith.divf %108, %109 : vector<32x1xf32>
    %cst_46 = arith.constant 9.99999974E-6 : f32
    %111 = vector.broadcast %cst_46 : f32 to vector<32x1xf32>
    %112 = arith.addf %110, %111 : vector<32x1xf32>
    %113 = math.rsqrt %112 : vector<32x1xf32>
    %114 = vector.broadcast %113 : vector<32x1xf32> to vector<32x32xf32>
    %115 = arith.mulf %105, %114 : vector<32x32xf32>
    %116 = vector.broadcast %98 : vector<1x32xf32> to vector<32x32xf32>
    %117 = arith.mulf %115, %116 : vector<32x32xf32>
    %118 = vector.broadcast %99 : vector<1x32xf32> to vector<32x32xf32>
    %119 = arith.addf %117, %118 : vector<32x32xf32>
    %c0_47 = arith.constant 0 : index
    %c0_48 = arith.constant 0 : index
    %120 = vector.load %arg9[%c0_47, %c0_48] : memref<32x128xf32, #tpu.memory_space<vmem>>, vector<32x128xf32>
    %cst_49 = arith.constant dense<0.000000e+00> : vector<32x128xf32>
    %121 = tpu.matmul %119, %120, %cst_49 {dimension_numbers = #tpu.dot_dimension_numbers<[1], [0], [0], [1], [0, 0, 1, 1], [], []>} : vector<32x32xf32>, vector<32x128xf32>, vector<32x128xf32> -> vector<32x128xf32>
    %c0_50 = arith.constant 0 : index
    %c0_51 = arith.constant 0 : index
    %122 = vector.load %arg10[%c0_50, %c0_51] : memref<1x128xf32, #tpu.memory_space<vmem>>, vector<1x128xf32>
    %123 = vector.broadcast %122 : vector<1x128xf32> to vector<32x128xf32>
    %124 = arith.addf %121, %123 : vector<32x128xf32>
    %cst_52 = arith.constant 0.000000e+00 : f32
    %125 = vector.broadcast %cst_52 : f32 to vector<32x128xf32>
    %126 = arith.maximumf %124, %125 : vector<32x128xf32>
    %c0_53 = arith.constant 0 : index
    %c0_54 = arith.constant 0 : index
    %127 = vector.load %arg11[%c0_53, %c0_54] : memref<128x32xf32, #tpu.memory_space<vmem>>, vector<128x32xf32>
    %cst_55 = arith.constant dense<0.000000e+00> : vector<32x32xf32>
    %128 = tpu.matmul %126, %127, %cst_55 {dimension_numbers = #tpu.dot_dimension_numbers<[1], [0], [0], [1], [0, 0, 1, 1], [], []>} : vector<32x128xf32>, vector<128x32xf32>, vector<32x32xf32> -> vector<32x32xf32>
    %c0_56 = arith.constant 0 : index
    %c0_57 = arith.constant 0 : index
    %129 = vector.load %arg12[%c0_56, %c0_57] : memref<1x32xf32, #tpu.memory_space<vmem>>, vector<1x32xf32>
    %130 = vector.broadcast %129 : vector<1x32xf32> to vector<32x32xf32>
    %131 = arith.addf %128, %130 : vector<32x32xf32>
    %132 = arith.addf %119, %131 : vector<32x32xf32>
    %c0_58 = arith.constant 0 : index
    %c0_59 = arith.constant 0 : index
    %133 = vector.load %arg13[%c0_58, %c0_59] : memref<1x32xf32, #tpu.memory_space<vmem>>, vector<1x32xf32>
    %c0_60 = arith.constant 0 : index
    %c0_61 = arith.constant 0 : index
    %134 = vector.load %arg14[%c0_60, %c0_61] : memref<1x32xf32, #tpu.memory_space<vmem>>, vector<1x32xf32>
    %cst_62 = arith.constant dense<0.000000e+00> : vector<32xf32>
    %135 = vector.multi_reduction <add>, %132, %cst_62 [1] : vector<32x32xf32> to vector<32xf32>
    %136 = vector.shape_cast %135 : vector<32xf32> to vector<32x1xf32>
    %cst_63 = arith.constant 3.200000e+01 : f32
    %137 = vector.broadcast %cst_63 : f32 to vector<32x1xf32>
    %138 = arith.divf %136, %137 : vector<32x1xf32>
    %139 = vector.broadcast %138 : vector<32x1xf32> to vector<32x32xf32>
    %140 = arith.subf %132, %139 : vector<32x32xf32>
    %141 = arith.mulf %140, %140 : vector<32x32xf32>
    %cst_64 = arith.constant dense<0.000000e+00> : vector<32xf32>
    %142 = vector.multi_reduction <add>, %141, %cst_64 [1] : vector<32x32xf32> to vector<32xf32>
    %143 = vector.shape_cast %142 : vector<32xf32> to vector<32x1xf32>
    %cst_65 = arith.constant 3.200000e+01 : f32
    %144 = vector.broadcast %cst_65 : f32 to vector<32x1xf32>
    %145 = arith.divf %143, %144 : vector<32x1xf32>
    %cst_66 = arith.constant 9.99999974E-6 : f32
    %146 = vector.broadcast %cst_66 : f32 to vector<32x1xf32>
    %147 = arith.addf %145, %146 : vector<32x1xf32>
    %148 = math.rsqrt %147 : vector<32x1xf32>
    %149 = vector.broadcast %148 : vector<32x1xf32> to vector<32x32xf32>
    %150 = arith.mulf %140, %149 : vector<32x32xf32>
    %151 = vector.broadcast %133 : vector<1x32xf32> to vector<32x32xf32>
    %152 = arith.mulf %150, %151 : vector<32x32xf32>
    %153 = vector.broadcast %134 : vector<1x32xf32> to vector<32x32xf32>
    %154 = arith.addf %152, %153 : vector<32x32xf32>
    %155 = vector.shape_cast %154 : vector<32x32xf32> to vector<2x16x32xf32>
    %c0_67 = arith.constant 0 : index
    %c0_68 = arith.constant 0 : index
    %c0_69 = arith.constant 0 : index
    %156 = vector.load %arg15[%c0_67, %c0_68, %c0_69] : memref<2x16x32xf32, #tpu.memory_space<vmem>>, vector<2x16x32xf32>
    tpu.vector_store %arg15[%c0_67, %c0_68, %c0_69], %155 {strides = array<i32>} : memref<2x16x32xf32, #tpu.memory_space<vmem>>, vector<2x16x32xf32>,
    return
  }
  func.func @transform_0(%arg0: i32) -> (i32, i32, i32) {
    %c0_i32 = arith.constant 0 : i32
    %c0_i32_0 = arith.constant 0 : i32
    %c0_i32_1 = arith.constant 0 : i32
    return %arg0, %c0_i32, %c0_i32_0 : i32, i32, i32
  }
  func.func @transform_1(%arg0: i32) -> (i32, i32, i32) {
    %c0_i32 = arith.constant 0 : i32
    %c0_i32_0 = arith.constant 0 : i32
    %c0_i32_1 = arith.constant 0 : i32
    return %arg0, %c0_i32, %c0_i32_0 : i32, i32, i32
  }
  func.func @transform_2(%arg0: i32) -> (i32, i32) {
    %c0_i32 = arith.constant 0 : i32
    %c0_i32_0 = arith.constant 0 : i32
    %c0_i32_1 = arith.constant 0 : i32
    return %c0_i32, %c0_i32_0 : i32, i32
  }
  func.func @transform_3(%arg0: i32) -> (i32, i32) {
    %c0_i32 = arith.constant 0 : i32
    %c0_i32_0 = arith.constant 0 : i32
    %c0_i32_1 = arith.constant 0 : i32
    return %c0_i32, %c0_i32_0 : i32, i32
  }
  func.func @transform_4(%arg0: i32) -> (i32, i32) {
    %c0_i32 = arith.constant 0 : i32
    %c0_i32_0 = arith.constant 0 : i32
    %c0_i32_1 = arith.constant 0 : i32
    return %c0_i32, %c0_i32_0 : i32, i32
  }
  func.func @transform_5(%arg0: i32) -> (i32, i32) {
    %c0_i32 = arith.constant 0 : i32
    %c0_i32_0 = arith.constant 0 : i32
    %c0_i32_1 = arith.constant 0 : i32
    return %c0_i32, %c0_i32_0 : i32, i32
  }
  func.func @transform_6(%arg0: i32) -> (i32, i32) {
    %c0_i32 = arith.constant 0 : i32
    %c0_i32_0 = arith.constant 0 : i32
    %c0_i32_1 = arith.constant 0 : i32
    return %c0_i32, %c0_i32_0 : i32, i32
  }
  func.func @transform_7(%arg0: i32) -> (i32, i32) {
    %c0_i32 = arith.constant 0 : i32
    %c0_i32_0 = arith.constant 0 : i32
    %c0_i32_1 = arith.constant 0 : i32
    return %c0_i32, %c0_i32_0 : i32, i32
  }
  func.func @transform_8(%arg0: i32) -> (i32, i32) {
    %c0_i32 = arith.constant 0 : i32
    %c0_i32_0 = arith.constant 0 : i32
    %c0_i32_1 = arith.constant 0 : i32
    return %c0_i32, %c0_i32_0 : i32, i32
  }
  func.func @transform_9(%arg0: i32) -> (i32, i32) {
    %c0_i32 = arith.constant 0 : i32
    %c0_i32_0 = arith.constant 0 : i32
    %c0_i32_1 = arith.constant 0 : i32
    return %c0_i32, %c0_i32_0 : i32, i32
  }
  func.func @transform_10(%arg0: i32) -> (i32, i32) {
    %c0_i32 = arith.constant 0 : i32
    %c0_i32_0 = arith.constant 0 : i32
    %c0_i32_1 = arith.constant 0 : i32
    return %c0_i32, %c0_i32_0 : i32, i32
  }
  func.func @transform_11(%arg0: i32) -> (i32, i32) {
    %c0_i32 = arith.constant 0 : i32
    %c0_i32_0 = arith.constant 0 : i32
    %c0_i32_1 = arith.constant 0 : i32
    return %c0_i32, %c0_i32_0 : i32, i32
  }
  func.func @transform_12(%arg0: i32) -> (i32, i32) {
    %c0_i32 = arith.constant 0 : i32
    %c0_i32_0 = arith.constant 0 : i32
    %c0_i32_1 = arith.constant 0 : i32
    return %c0_i32, %c0_i32_0 : i32, i32
  }
  func.func @transform_13(%arg0: i32) -> (i32, i32) {
    %c0_i32 = arith.constant 0 : i32
    %c0_i32_0 = arith.constant 0 : i32
    %c0_i32_1 = arith.constant 0 : i32
    return %c0_i32, %c0_i32_0 : i32, i32
  }
  func.func @transform_14(%arg0: i32) -> (i32, i32, i32) {
    %c0_i32 = arith.constant 0 : i32
    %c0_i32_0 = arith.constant 0 : i32
    %c0_i32_1 = arith.constant 0 : i32
    return %arg0, %c0_i32, %c0_i32_0 : i32, i32, i32
  }
}

</mosaic_0001>

<bundles_post_ra>
// kernel: tpu_custom_call.1
= control target key start
LH: loop header
LB: loop body
LE: loop exit
PB: predicated region body
PF: predicated region fallthrough
CT: control target
= control target key end

     0   :  { %s4457_s0 = inlined_call_operand.vmem [shape: f32[4,16,32], index: 0, kind: input, shape index: {}]   ;;  %s4458_s1 = inlined_call_operand.hbm [shape: s32[4,1,16], index: 1, kind: input, shape index: {}]   ;;  %s4459_s2 = inlined_call_operand.vmem [shape: f32[32,96], index: 2, kind: input, shape index: {}]   ;;  %s4460_s3 = inlined_call_operand.vmem [shape: f32[1,96], index: 3, kind: input, shape index: {}]   ;;  %s4461_s4 = inlined_call_operand.vmem [shape: f32[32,32], index: 4, kind: input, shape index: {}]   ;;  %s4462_s5 = inlined_call_operand.vmem [shape: f32[1,32], index: 5, kind: input, shape index: {}]   ;;  %s4463_s6 = inlined_call_operand.vmem [shape: f32[1,32], index: 6, kind: input, shape index: {}]   ;;  %s4464_s7 = inlined_call_operand.vmem [shape: f32[1,32], index: 7, kind: input, shape index: {}]   ;;  %s4465_s8 = inlined_call_operand.vmem [shape: f32[32,128], index: 8, kind: input, shape index: {}]   ;;  %s4466_s9 = inlined_call_operand.vmem [shape: f32[1,128], index: 9, kind: input, shape index: {}]   ;;  %s4467_s10 = inlined_call_operand.vmem [shape: f32[128,32], index: 10, kind: input, shape index: {}]   ;;  %s4468_s11 = inlined_call_operand.vmem [shape: f32[1,32], index: 11, kind: input, shape index: {}]   ;;  %s4469_s12 = inlined_call_operand.vmem [shape: f32[1,32], index: 12, kind: input, shape index: {}]   ;;  %s4470_s13 = inlined_call_operand.vmem [shape: f32[1,32], index: 13, kind: input, shape index: {}]   ;;  %s4471_s14 = inlined_call_operand.hbm [shape: f32[4,16,32], index: 14, kind: output, shape index: {}]  }
   0x1   :  { %4478 = sst [smem:[#allocation12_spill]] %s4471_s14 }
   0x2   :  { %19 = vsyncpa [#allocation3], 0 }
   0x3   :  { %21 = vsyncpa [#allocation3 + $0x1], 0 }
   0x4   :  { %22 = vsyncpa [#allocation4], 0 }
   0x5   :  { %24 = vsyncpa [#allocation4 + $0x1], 0  ;;  %s3869_s29 = smov 0   ;;  %s3871_s30 = smov 0  }
   0x6   :  { %s3873_s15 = smov 0   ;;  %s3875_s16 = smov 0  }
   0x7 LB: > { %4479 = sst [smem:[#allocation8_spill]] %s3760_s29  ;;  %s3890_s17 = sadd.s32 4294967295, %s3772_s16   ;;  %s3772_s16 = sphi %s3875_s16, %s4496_s16   ;;  %s3768_s15 = sphi %s3873_s15, %s4498_s15   ;;  %s3764_s30 = sphi %s3871_s30, %s4500_s30   ;;  %s3760_s29 = sphi %s3869_s29, %s4499_s29  }
   0x8   : > { %4480 = sst [smem:[#allocation9_spill]] %s3768_s15  ;;  %s2922_s18 = sadd.s32 4294967294, %s3772_s16  }
   0x9   : > { %s3894_s19 = sadd.s32 1, %s3772_s16   ;;  %s63_s20 = sadd.s32 1, %s3768_s15 }
   0xa   : > { %4481 = sst [smem:[#allocation10_spill]] %s3894_s19  ;;  %s60_s21 = ssub.s32 %s3772_s16, %s3894_s19 }
   0xb   : > { %p70_p0 = scmp.ne.s32.totalorder %s3768_s15, %s3764_s30  ;;  %p61_p1 = scmp.eq.s32.totalorder %s60_s21, 0 }
   0xc   : > { %p71_p2 = scmp.eq.s32.totalorder %s3772_s16, 0  ;;  %p76_p3 = scmp.ne.s32.totalorder %s3764_s30, %s3760_s29 }
   0xd   : > { %p77_p4 = scmp.eq.s32.totalorder %s3890_s17, 0  ;;  %p352_p7 = scmp.eq.s32.totalorder %s3890_s17, 1 }
   0xe   : > { %s3906_s22 = scalar_select %p61_p1, %s3768_s15, %s63_s20  }
   0xf   : > { %p3908_p5 = por %p71_p2, %p70_p0  ;;  %p3912_p6 = por %p77_p4, %p76_p3 }
  0x10   : > { %4482 = sst [smem:[#allocation11_spill]] %s3906_s22  ;;  %p358_p8 = scmp.eq.s32.totalorder %s2922_s18, 1 }
  0x11   : > { %p3460_p10 = scmp.lt.s32.totalorder %s3772_s16, 2  ;;  %p3919_p11 = por %p352_p7, %p70_p0 }
  0x12   : > { %p3923_p12 = por %p358_p8, %p76_p3  ;;  %s424_s27 = sand.u32 1, %s3768_s15  }
  0x13   : > { %s4485_s25 = scalar_select %p3919_p11, 1, 0 }
  0x14   : > { %s4486_s26 = scalar_select %p3923_p12, 1, 0 }
  0x15   : > { %s3008_s28 = sshll.u32 %s3772_s16, 5  ;;  %s2925_s20 = sshll.u32 %s424_s27, 1 }
  0x16   : > { %s3932_s19 = scalar_lea.hbm %s4458_s1, %s3008_s28  ;;  %s428_s18 = scalar_lea.vmem [#allocation2], %s2925_s20 }
  0x17   : > { %s435_s29 = sshll.u32 %s428_s18, 4  ;;  %p3936_p13 = pnand %p3460_p10, %p3908_p5  ;;  %s3940_s29 = int_to_ptr.vmem [resolvable:$true] %s435_s29 }
  0x18   : > { %s3942_s15 = scalar_lea.sflag [#allocation3], %s424_s27  ;;  %s3676_s22 = scalar_lea.hbm %s3932_s19, 32 }
  0x19   : > { %p3677_p0 = scmp.ne.s32.totalorder %s3932_s19, %s3676_s22  ;;  %p3678_p1 = pneg %p3936_p13 }
  0x1a   : > { %s3681_s20 = scalar_lea.hbm %s4458_s1, 64  ;;  %p3682_p4 = scmp.lt.u32.totalorder %s3932_s19, %s4458_s1 }
  0x1b   : > { %p3679_p2 = pnand %p3678_p1, %p3677_p0  ;;  %p3683_p5 = scmp.lt.u32.totalorder %s3681_s20, %s3676_s22 }
  0x1c   : > { %p3685_p8 = scmp.lt.u32.totalorder %s3676_s22, %s3932_s19 }
  0x1d   : > { %p3680_p3 = pneg %p3679_p2  ;;  %p3684_p7 = por %p3683_p5, %p3682_p4 }
  0x1f   : > { %p3686_p10 = por %p3685_p8, %p3684_p7 }
  0x21   : > { %p3687_p9 = pnand %p3686_p10, %p3680_p3 }
  0x23   : > { %3690 = shalt.err (!%p3687_p9)
}
  0x24   : > { %s3691_s27 = scalar_lea.vmem %s3940_s29, 32  ;;  %s3774_s28 = smov [#allocation2]  }
  0x25   : > { %p3692_p0 = scmp.ne.s32.totalorder %s3940_s29, %s3691_s27  ;;  %s3696_s23 = sshll.u32 %s3774_s28, 4  ;;  %s3697_s23 = int_to_ptr.vmem [resolvable:$false] %s3696_s23 }
  0x26   : > { %s3698_s21 = scalar_lea.vmem %s3697_s23, 64  ;;  %p3699_p11 = scmp.lt.s32.totalorder %s3940_s29, %s3697_s23 }
  0x27   : > { %p3694_p2 = pnand %p3692_p0, %p3678_p1  ;;  %p3700_p4 = scmp.lt.s32.totalorder %s3698_s21, %s3691_s27 }
  0x29   : > { %p3695_p12 = pneg %p3694_p2  ;;  %p3701_p5 = por %p3700_p4, %p3699_p11 }
  0x2b   : > { %p3702_p7 = pnand %p3701_p5, %p3695_p12 }
  0x2d   : > { %3705 = shalt.err (!%p3702_p7)
}
  0x2e   : > { %s3775_s22 = smov 16   ;;  %s3776_s20 = smov 1  }
  0x2f   : > { %3455 = dma.hbm_to_vmem [thread:$0]  (!%p3936_p13), %s3932_s19, 32, %s3940_s29, %s3942_s15, %s3775_s22, %s3775_s22, %s3776_s20  }
  0x30   : > { %p2928_p9 = scmp.ge.s32.totalorder %s3772_s16, 1  ;;  %p443_p1 = scmp.lt.s32.totalorder %s3772_s16, 3 }
  0x32   : > { %p444_p3 = pnand %p2928_p9, %p443_p1 }
  0x33   : > { %s3973_s18 = sand.u32 (!%p444_p3), 1, %s3764_s30  }
  0x34   : > { %447 = sbr.rel (%p444_p3) target bundleno = 4269 (0x10ad), region = 76  ;;  %s2929_s27 = sshll.u32 (!%p444_p3), %s3973_s18, 1 }
  0x35   : > { %s450_s28 = scalar_lea.sflag (!%p444_p3), [#allocation3], %s3973_s18  ;;  %s3977_s23 = scalar_lea.vmem (!%p444_p3), [#allocation2], %s2929_s27 }
  0x3b   : > { %3751 = dma.done.wait (%p3912_p6), %s450_s28, 32  }
  0x3c   : > { %3753 = vsyncadd (%p3912_p6), %s450_s28, 4294967264  ;;  %s2931_s14 = sshll.u32 %s3890_s17, 1  ;;  %vm528_vm0 = vcmask 261120   ;;  %v517_v0 = vld [vmem:[%s4459_s2] sm:$0xff]  ;;  %v518_v1 = vld [vmem:[%s4459_s2 + $0x8] sm:$0xff]  ;;  %vm648_vm1 = vcmask 64512   ;;  %v632_v30 = vlaneseq }
  0x3d   : > { %p505_p11 = scmp.lt.s32.totalorder %s2931_s14, 3  ;;  %v519_v2 = vld [vmem:[%s4459_s2 + $0x10] sm:$0xff]  ;;  %v3312_v3 = vpack.c.bf16 %v518_v1, %v517_v0  ;;  %v520_v4 = vld [vmem:[%s4459_s2 + $0x18] sm:$0xff]  ;;  %v2934_v10 = vld [vmem:[%s4460_s3] ss:$0 sm:$0xff]  ;;  %s3777_s20 = smov 96  }
  0x3e   : > { %v3316_v6 = vpack.c.bf16 %v520_v4, %v519_v2  ;;  %vm4034_vm2 = vmpackc.low %vm648_vm1, %vm648_vm1  ;;  %v626_v31 = vld [vmem:[%s3977_s23] sm:$0x1]  ;;  %v633_v32 = vshrl.u32 %v632_v30, 7  ;;  %v3778_v34 = vmov 0   ;;  %v627_v36 = vld [vmem:[%s3977_s23 + $0x1] sm:$0x1] }
  0x3f   : > { %s4502_s14 = smov (!%p505_p11, %s2931_s14), 3  ;;  %3313 = vmatprep.subr.bf16.mxu1 %v3312_v3  ;;  %vm628_vm3 = vcmp.ne.s32.totalorder %v626_v31, 0  ;;  %vm629_vm4 = vcmp.ne.s32.totalorder %v627_v36, 0  ;;  %vm829_vm6 = vcmask 130048   ;;  %s3779_s23 = smov 64   ;;  %vm2328_vm8 = vcmask 195584  }
  0x40   : > { %s3009_s29 = sshll.u32 %s4502_s14, 4  ;;  %3315 = vmatpush3.bf16.msra.mxu1 %v3312_v3  ;;  %v634_v33 = vsub.s32 0, %v633_v32  ;;  %v630_v35 = vsel %vm628_vm3, 1, %v3778_v34  ;;  %v631_v40 = vsel %vm629_vm4, 1, %v3778_v34  ;;  %s3780_s24 = smov 88  }
  0x41   : > { %s3987_s21 = scalar_lea.vmem %s4457_s0, %s3009_s29  ;;  %3317 = vmatprep.subr.bf16.mxu1 %v3316_v6  ;;  %s3781_s27 = smov 120  }
  0x42   : > { %v513_v5 = vld [vmem:[%s3987_s21] sm:$0xff]  ;;  %v514_v7 = vld [vmem:[%s3987_s21 + $0x8] sm:$0xff]  ;;  %v515_v8 = vld [vmem:[%s3987_s21 + $0x10] sm:$0xff]  ;;  %v4054_v37 = vrot.slane %v630_v35, %v634_v33  ;;  %v4059_v44 = vrot.slane %v631_v40, %v634_v33  ;;  %s3782_s28 = smov 56   ;;  %s3783_s14 = smov 80  }
  0x43   : > { %3128 = vmatprep.mubr.msk.f32.mxu1 %vm528_vm0, %v513_v5  ;;  %v516_v9 = vld [vmem:[%s3987_s21 + $0x18] sm:$0xff]  ;;  %s3784_s29 = smov 112   ;;  %s3785_s15 = smov 48  }
  0x44   : > { %3319 = vmatpush3.bf16.msra.mxu1 %v3316_v6  ;;  %vm640_vm5 = vcmp.eq.s32.totalorder %v4054_v37, 1  ;;  %vm641_vm7 = vcmp.eq.s32.totalorder %v4059_v44, 1  ;;  %s3786_s19 = smov 72   ;;  %s3787_s22 = smov 104  }
  0x45   : > { %p4491_p12 = scmp.ne.s32.totalorder %s4485_s25, 0 }
  0x47   : > { %3129 = vmatmul.mubr.msk.f32.vlgmr.msra.gmra.mrb[0].mxu1 %vm528_vm0, %v514_v7 }
  0x48   : > { %3131 = vmatprep.mubr.msk.f32.mxu1 %vm528_vm0, %v515_v8 }
  0x4b   : > { %3132 = vmatmul.mubr.msk.f32.gmra.mrb[2].mxu1 %vm528_vm0, %v516_v9 }
 0x11a   : > { %v3130_v11 = vpop.f32.mrb[0].mxu1 }
 0x11b   : > { %v4012_v12 = vadd.f32 %v3130_v11, %v2934_v10  ;;  %v607_v13 = vpop.f32.mrb[1].mxu1 }
 0x11c   : > { %v4014_v14 = vadd.f32 %v2934_v10, %v607_v13 }
 0x11e   : > { %3138 = vmatprep.mubr.msk.f32.mxu1 %vm648_vm1, %v4014_v14  ;;  %v4020_v15 = vpack.i.bf16 %v4012_v12, %v4014_v14  ;;  %v3133_v16 = vpop.f32.mrb[2].mxu1 }
 0x11f   : > { %v4022_v17 = vadd.f32 %v3133_v16, %v2934_v10  ;;  %v617_v18 = vpop.f32.mrb[3].mxu1 }
 0x120   : > { %3513 = vrot.lane.b32.xlu0 %v4020_v15, %s3777_s20  ;;  %v4025_v19 = vadd.f32 %v2934_v10, %v617_v18 }
 0x122   : > { %v4029_v20 = vpack.i.bf16 %v4022_v17, %v4025_v19 }
 0x124   : > { %3518 = vrot.lane.b32.xlu0 %v4029_v20, %s3777_s20  ;;  %s3788_s20 = smov 40  }
 0x192   : > { %v3514_v21 = vpop.permute.xlu0 %3513 }
 0x193   : > { %v3516_v22 = vunpack.i.h.bf16 %v3514_v21  ;;  %v3515_v23 = vunpack.i.l.bf16 %v3514_v21 }
 0x195   : > { %v3320_v25 = vpack.c.bf16 %v3516_v22, %v3515_v23 }
 0x196   : > { %v3519_v26 = vpop.permute.xlu0 %3518 }
 0x197   : > { %3322 = vmatprep.subr.msk.bf16.mxu1 %vm4034_vm2, %v3320_v25  ;;  %v3521_v27 = vunpack.i.h.bf16 %v3519_v26  ;;  %v3520_v28 = vunpack.i.l.bf16 %v3519_v26 }
 0x198   : > { %3325 = vmatpush3.bf16.xpose.msk.msra.mxu1 %vm4034_vm2, %v3320_v25 }
 0x199   : > { %v3326_v29 = vpack.c.bf16 %v3521_v27, %v3520_v28 }
 0x19b   : > { %3328 = vmatprep.subr.msk.bf16.mxu1 %vm4034_vm2, %v3326_v29 }
 0x19f   : > { %3139 = vmatmul.mubr.msk.f32.vlgmr.msra.gmra.mrb[4].mxu1 %vm648_vm1, %v4012_v12 }
 0x1a0   : > { %3331 = vmatpush3.bf16.xpose.msk.msra.mxu1 %vm4034_vm2, %v3326_v29  ;;  %3145 = vmatprep.mubr.msk.f32.mxu1 %vm648_vm1, %v4025_v19 }
 0x1a7   : > { %3146 = vmatmul.mubr.msk.f32.vlgmr.msra.gmra.mrb[6].mxu1 %vm648_vm1, %v4022_v17 }
 0x272   : > { %v3140_v38 = vpop.f32.mrb[4].mxu1 }
 0x273   : > { %v723_v39 = vpop.f32.mrb[5].mxu1  ;;  %v822_v41 = vmul.f32 0.35355338, %v3140_v38 }
 0x274   : > { %v821_v42 = vmul.f32 0.35355338, %v723_v39 }
 0x275   : > { %v826_v46 = vsel %vm640_vm5, -1e+09, %v822_v41 }
 0x276   : > { %v825_v43 = vsel %vm640_vm5, -1e+09, %v821_v42  ;;  %v833_v50 = vsel %vm829_vm6, %v826_v46, -inf }
 0x277   : > { %v830_v45 = vsel %vm829_vm6, %v825_v43, -inf }
 0x278   : > { %831 = vmax.xlane.f32.xlu1 %v830_v45 }
 0x27a   : > { %v3147_v47 = vpop.f32.mrb[6].mxu1 }
 0x27b   : > { %v824_v48 = vmul.f32 0.35355338, %v3147_v47  ;;  %v812_v49 = vpop.f32.mrb[7].mxu1 }
 0x27c   : > { %v823_v51 = vmul.f32 0.35355338, %v812_v49  ;;  %834 = vmax.xlane.f32.xlu1 %v833_v50 }
 0x27d   : > { %v828_v52 = vsel %vm641_vm7, -1e+09, %v824_v48 }
 0x27e   : > { %v839_v53 = vsel %vm829_vm6, %v828_v52, -inf  ;;  %v827_v54 = vsel %vm641_vm7, -1e+09, %v823_v51 }
 0x27f   : > { %v836_v55 = vsel %vm829_vm6, %v827_v54, -inf }
 0x280   : > { %840 = vmax.xlane.f32.xlu1 %v839_v53  ;;  %837 = vmax.xlane.f32.xlu0 %v836_v55 }
 0x291   : > { %3523 = vrot.lane.b32.xlu1 %v4020_v15, %s3779_s23 }
 0x295   : > { %3533 = vrot.lane.b32.xlu1 %v4020_v15, %s3780_s24 }
 0x296   : > { %3528 = vrot.lane.b32.xlu0 %v4029_v20, %s3779_s23  ;;  %s3789_s23 = smov 8  }
 0x299   : > { %3538 = vrot.lane.b32.xlu1 %v4029_v20, %s3780_s24  ;;  %s3790_s24 = smov 16  }
 0x29a   : > { %1139 = vrot.lane.b32.xlu0 %v4025_v19, %s3781_s27 }
 0x29d   : > { %1048 = vrot.lane.b32.xlu1 %v4014_v14, %s3781_s27 }
 0x2a1   : > { %1050 = vrot.lane.b32.xlu1 %v4012_v12, %s3781_s27 }
 0x305   : > { %v832_v56 = vpop.xlane.xlu1 %831 }
 0x306   : > { %v842_v57 = vsub.f32 %v825_v43, %v832_v56 }
 0x308   : > { %v846_v60 = vmul.f32 1.442695, %v842_v57 }
 0x309   : > { %v835_v58 = vpop.xlane.xlu1 %834 }
 0x30a   : > { %v843_v59 = vsub.f32 %v826_v46, %v835_v58 }
 0x30c   : > { %v848_v61 = vmul.f32 1.442695, %v843_v59 }
 0x30d   : > { %v841_v62 = vpop.xlane.xlu1 %840  ;;  %v838_v63 = vpop.xlane.xlu0 %837 }
 0x30e   : > { %3592 = vpow2.f32 %v848_v61  ;;  %v845_v0 = vsub.f32 %v828_v52, %v841_v62  ;;  %v844_v2 = vsub.f32 %v827_v54, %v838_v63 }
 0x30f   : > { %3594 = vpow2.f32 %v846_v60 }
 0x310   : > { %v852_v1 = vmul.f32 1.442695, %v845_v0  ;;  %v850_v9 = vmul.f32 1.442695, %v844_v2 }
 0x311   : > { %v3524_v3 = vpop.permute.xlu1 %3523  ;;  %v3529_v4 = vpop.permute.xlu0 %3528 }
 0x312   : > { %v3526_v5 = vunpack.i.h.bf16 %v3524_v3  ;;  %v3525_v6 = vunpack.i.l.bf16 %v3524_v3  ;;  %v3531_v7 = vunpack.i.h.bf16 %v3529_v4  ;;  %v3530_v8 = vunpack.i.l.bf16 %v3529_v4 }
 0x313   : > { %3596 = vpow2.f32 %v852_v1 }
 0x314   : > { %v3332_v10 = vpack.c.bf16 %v3526_v5, %v3525_v6  ;;  %v3336_v13 = vpack.c.bf16 %v3531_v7, %v3530_v8  ;;  %3598 = vpow2.f32 %v850_v9 }
 0x315   : > { %v3534_v11 = vpop.permute.xlu1 %3533  ;;  %v1140_v51 = vpop.permute.xlu0 %1139 }
 0x316   : > { %v3536_v16 = vunpack.i.h.bf16 %v3534_v11  ;;  %v3535_v18 = vunpack.i.l.bf16 %v3534_v11  ;;  %3333 = vmatprep.subr.bf16.mxu1 %v3332_v10 }
 0x317   : > { %3335 = vmatpush3.bf16.msra.mxu1 %v3332_v10 }
 0x318   : > { %v3593_v21 = vpop.eup %3592  ;;  %3337 = vmatprep.subr.bf16.mxu1 %v3336_v13  ;;  %v3340_v22 = vpack.c.bf16 %v3536_v16, %v3535_v18 }
 0x319   : > { %v3539_v23 = vpop.permute.xlu1 %3538  ;;  %v857_v25 = vsel %vm829_vm6, %v3593_v21, 0.0  ;;  %v3595_v26 = vpop.eup %3594 }
 0x31a   : > { %858 = vadd.xlane.f32.xlu1 %v857_v25  ;;  %3342 = vmatprep.subr.msk.bf16.mxu0 %vm4034_vm2, %v3340_v22  ;;  %v854_v28 = vsel %vm829_vm6, %v3595_v26, 0.0  ;;  %v3541_v41 = vunpack.i.h.bf16 %v3539_v23  ;;  %v3540_v42 = vunpack.i.l.bf16 %v3539_v23 }
 0x31b   : > { %3345 = vmatpush3.bf16.xpose.msk.msra.mxu0 %vm4034_vm2, %v3340_v22 }
 0x31c   : > { %v3346_v46 = vpack.c.bf16 %v3541_v41, %v3540_v42 }
 0x31d   : > { %v1049_v27 = vpop.permute.xlu1 %1048  ;;  %v3597_v29 = vpop.eup %3596 }
 0x31e   : > { %855 = vadd.xlane.f32.xlu1 %v854_v28  ;;  %3166 = vmatprep.mubr.msk.f32.mxu0 %vm648_vm1, %v1049_v27  ;;  %v863_v31 = vsel %vm829_vm6, %v3597_v29, 0.0  ;;  %v3599_v32 = vpop.eup %3598 }
 0x31f   : > { %v860_v33 = vsel %vm829_vm6, %v3599_v32, 0.0 }
 0x321   : > { %v1051_v30 = vpop.permute.xlu1 %1050 }
 0x322   : > { %864 = vadd.xlane.f32.xlu1 %v863_v31  ;;  %3167 = vmatmul.mubr.msk.f32.vlgmr.msra.gmra.mrb[0].mxu0 %vm648_vm1, %v1051_v30 }
 0x326   : > { %861 = vadd.xlane.f32.xlu1 %v860_v33 }
 0x337   : > { %1141 = vrot.lane.b32.xlu1 %v4022_v17, %s3781_s27  ;;  %s3791_s27 = smov 24  }
 0x3a7   : > { %v859_v34 = vpop.xlane.xlu1 %858 }
 0x3a8   : > { %3600 = vrcp.f32 %v859_v34 }
 0x3ab   : > { %v856_v35 = vpop.xlane.xlu1 %855 }
 0x3ac   : > { %3602 = vrcp.f32 %v856_v35 }
 0x3af   : > { %v865_v36 = vpop.xlane.xlu1 %864 }
 0x3b0   : > { %3604 = vrcp.f32 %v865_v36 }
 0x3b2   : > { %v3601_v39 = vpop.eup %3600 }
 0x3b3   : > { %v862_v38 = vpop.xlane.xlu1 %861  ;;  %v869_v45 = vmul.f32 %v3601_v39, %v3593_v21 }
 0x3b4   : > { %3606 = vrcp.f32 %v862_v38 }
 0x3b6   : > { %v3603_v40 = vpop.eup %3602 }
 0x3b7   : > { %v867_v43 = vmul.f32 %v3603_v40, %v3595_v26  ;;  %v1142_v52 = vpop.permute.xlu1 %1141 }
 0x3b9   : > { %3152 = vmatprep.mubr.msk.f32.mxu1 %vm829_vm6, %v867_v43 }
 0x3ba   : > { %3153 = vmatmul.mubr.msk.f32.vlgmr.msra.gmra.mrb[8].mxu1 %vm829_vm6, %v869_v45  ;;  %v3605_v47 = vpop.eup %3604 }
 0x3bb   : > { %3339 = vmatpush3.bf16.msra.mxu1 %v3336_v13  ;;  %v873_v50 = vmul.f32 %v3605_v47, %v3597_v29 }
 0x3bc   : > { %3348 = vmatprep.subr.msk.bf16.mxu1 %vm4034_vm2, %v3346_v46 }
 0x3be   : > { %v3607_v48 = vpop.eup %3606 }
 0x3bf   : > { %v871_v49 = vmul.f32 %v3607_v48, %v3599_v32 }
 0x3c1   : > { %3159 = vmatprep.mubr.msk.f32.mxu1 %vm829_vm6, %v871_v49 }
 0x3c2   : > { %3160 = vmatmul.mubr.msk.f32.vlgmr.msra.gmra.mrb[10].mxu1 %vm829_vm6, %v873_v50 }
 0x3c3   : > { %3173 = vmatprep.mubr.msk.f32.mxu1 %vm648_vm1, %v1140_v51 }
 0x3c4   : > { %3351 = vmatpush3.bf16.xpose.msk.msra.mxu1 %vm4034_vm2, %v3346_v46 }
 0x3cb   : > { %3174 = vmatmul.mubr.msk.f32.vlgmr.msra.gmra.mrb[12].mxu1 %vm648_vm1, %v1142_v52 }
 0x3f5   : > { %v3168_v53 = vpop.f32.mrb[0].mxu0 }
 0x3f6   : > { %v1231_v54 = vmul.f32 0.35355338, %v3168_v53  ;;  %v1130_v55 = vpop.f32.mrb[1].mxu0 }
 0x3f7   : > { %v1230_v56 = vmul.f32 0.35355338, %v1130_v55 }
 0x3f8   : > { %v1235_v57 = vsel %vm640_vm5, -1e+09, %v1231_v54 }
 0x3f9   : > { %v1241_v58 = vsel %vm829_vm6, %v1235_v57, -inf  ;;  %v1234_v59 = vsel %vm640_vm5, -1e+09, %v1230_v56 }
 0x3fa   : > { %1242 = vmax.xlane.f32.xlu1 %v1241_v58  ;;  %v1238_v60 = vsel %vm829_vm6, %v1234_v59, -inf }
 0x3fb   : > { %1239 = vmax.xlane.f32.xlu0 %v1238_v60 }
 0x487   : > { %v1243_v2 = vpop.xlane.xlu1 %1242 }
 0x488   : > { %v1240_v61 = vpop.xlane.xlu0 %1239  ;;  %v1251_v4 = vsub.f32 %v1235_v57, %v1243_v2 }
 0x489   : > { %v1250_v62 = vsub.f32 %v1234_v59, %v1240_v61 }
 0x48a   : > { %v1256_v8 = vmul.f32 1.442695, %v1251_v4 }
 0x48b   : > { %v1254_v63 = vmul.f32 1.442695, %v1250_v62 }
 0x48d   : > { %3608 = vpow2.f32 %v1254_v63  ;;  %v4110_v0 = vpop.f32.mrb[8].mxu1 }
 0x48e   : > { %v4112_v1 = vpop.f32.mrb[9].mxu1  ;;  %3610 = vpow2.f32 %v1256_v8 }
 0x495   : > { %v4114_v3 = vpop.f32.mrb[10].mxu1 }
 0x496   : > { %v4116_v5 = vpop.f32.mrb[11].mxu1 }
 0x497   : > { %v3609_v6 = vpop.eup %3608 }
 0x498   : > { %v1262_v7 = vsel %vm829_vm6, %v3609_v6, 0.0  ;;  %v3611_v23 = vpop.eup %3610 }
 0x499   : > { %1263 = vadd.xlane.f32.xlu1 %v1262_v7  ;;  %v1265_v25 = vsel %vm829_vm6, %v3611_v23, 0.0 }
 0x49e   : > { %v3175_v9 = vpop.f32.mrb[12].mxu1 }
 0x49f   : > { %v1221_v10 = vpop.f32.mrb[13].mxu1  ;;  %v1233_v11 = vmul.f32 0.35355338, %v3175_v9 }
 0x4a0   : > { %v1232_v13 = vmul.f32 0.35355338, %v1221_v10 }
 0x4a1   : > { %v1237_v21 = vsel %vm641_vm7, -1e+09, %v1233_v11 }
 0x4a2   : > { %v1236_v16 = vsel %vm641_vm7, -1e+09, %v1232_v13  ;;  %v1247_v22 = vsel %vm829_vm6, %v1237_v21, -inf }
 0x4a3   : > { %v1244_v18 = vsel %vm829_vm6, %v1236_v16, -inf }
 0x4a4   : > { %1245 = vmax.xlane.f32.xlu0 %v1244_v18 }
 0x4a8   : > { %1248 = vmax.xlane.f32.xlu0 %v1247_v22 }
 0x4aa   : > { %3543 = vrot.lane.b32.xlu1 %v4020_v15, %s3782_s28 }
 0x4ac   : > { %1266 = vadd.xlane.f32.xlu0 %v1265_v25 }
 0x4ae   : > { %3553 = vrot.lane.b32.xlu1 %v4020_v15, %s3783_s14 }
 0x4b2   : > { %3558 = vrot.lane.b32.xlu1 %v4029_v20, %s3783_s14  ;;  %s3792_s14 = smov [#allocation5]  }
 0x4b6   : > { %1458 = vrot.lane.b32.xlu1 %v4012_v12, %s3784_s29 }
 0x4c2   : > { %3548 = vrot.lane.b32.xlu0 %v4029_v20, %s3782_s28 }
 0x526   : > { %v1264_v26 = vpop.xlane.xlu1 %1263 }
 0x527   : > { %3612 = vrcp.f32 %v1264_v26 }
 0x52a   : > { %v3544_v27 = vpop.permute.xlu1 %3543 }
 0x52b   : > { %v3546_v28 = vunpack.i.h.bf16 %v3544_v27  ;;  %v3545_v29 = vunpack.i.l.bf16 %v3544_v27 }
 0x52d   : > { %v3352_v30 = vpack.c.bf16 %v3546_v28, %v3545_v29 }
 0x52e   : > { %v3554_v31 = vpop.permute.xlu1 %3553 }
 0x52f   : > { %v3556_v32 = vunpack.i.h.bf16 %v3554_v31  ;;  %v3555_v33 = vunpack.i.l.bf16 %v3554_v31  ;;  %3353 = vmatprep.subr.bf16.mxu0 %v3352_v30 }
 0x530   : > { %3355 = vmatpush3.bf16.msra.mxu0 %v3352_v30 }
 0x531   : > { %v3613_v34 = vpop.eup %3612  ;;  %v3360_v35 = vpack.c.bf16 %v3556_v32, %v3555_v33  ;;  %v1246_v36 = vpop.xlane.xlu0 %1245 }
 0x532   : > { %v1252_v38 = vsub.f32 %v1236_v16, %v1246_v36  ;;  %v1275_v39 = vmul.f32 %v3613_v34, %v3609_v6  ;;  %v3559_v46 = vpop.permute.xlu1 %3558 }
 0x533   : > { %3362 = vmatprep.subr.msk.bf16.mxu0 %vm4034_vm2, %v3360_v35  ;;  %v3561_v48 = vunpack.i.h.bf16 %v3559_v46  ;;  %v3560_v49 = vunpack.i.l.bf16 %v3559_v46 }
 0x534   : > { %v1258_v40 = vmul.f32 1.442695, %v1252_v38  ;;  %3180 = vmatprep.mubr.msk.f32.mxu0 %vm829_vm6, %v1275_v39 }
 0x535   : > { %v1249_v41 = vpop.xlane.xlu0 %1248  ;;  %v3366_v55 = vpack.c.bf16 %v3561_v48, %v3560_v49 }
 0x536   : > { %3614 = vpow2.f32 %v1258_v40  ;;  %v1253_v42 = vsub.f32 %v1237_v21, %v1249_v41  ;;  %v1459_v60 = vpop.permute.xlu1 %1458 }
 0x538   : > { %v1260_v43 = vmul.f32 1.442695, %v1253_v42 }
 0x539   : > { %v1267_v45 = vpop.xlane.xlu0 %1266 }
 0x53a   : > { %3616 = vpow2.f32 %v1260_v43 }
 0x53b   : > { %3618 = vrcp.f32 %v1267_v45 }
 0x53d   : > { %v3549_v47 = vpop.permute.xlu0 %3548 }
 0x53e   : > { %v3551_v50 = vunpack.i.h.bf16 %v3549_v47  ;;  %v3550_v51 = vunpack.i.l.bf16 %v3549_v47 }
 0x540   : > { %v3615_v52 = vpop.eup %3614  ;;  %v3356_v53 = vpack.c.bf16 %v3551_v50, %v3550_v51 }
 0x541   : > { %v1268_v54 = vsel %vm829_vm6, %v3615_v52, 0.0 }
 0x542   : > { %1269 = vadd.xlane.f32.xlu1 %v1268_v54  ;;  %3357 = vmatprep.subr.bf16.mxu1 %v3356_v53 }
 0x543   : > { %3359 = vmatpush3.bf16.msra.mxu1 %v3356_v53 }
 0x544   : > { %v3617_v56 = vpop.eup %3616  ;;  %3368 = vmatprep.subr.msk.bf16.mxu1 %vm4034_vm2, %v3366_v55 }
 0x545   : > { %v3619_v57 = vpop.eup %3618  ;;  %v1271_v58 = vsel %vm829_vm6, %v3617_v56, 0.0 }
 0x546   : > { %v1277_v59 = vmul.f32 %v3619_v57, %v3611_v23  ;;  %1272 = vadd.xlane.f32.xlu0 %v1271_v58 }
 0x548   : > { %3181 = vmatmul.mubr.msk.f32.vlgmr.msra.gmra.mrb[2].mxu0 %vm829_vm6, %v1277_v59 }
 0x549   : > { %3365 = vmatpush3.bf16.xpose.msk.msra.mxu0 %vm4034_vm2, %v3360_v35 }
 0x553   : > { %1549 = vrot.lane.b32.xlu1 %v4022_v17, %s3784_s29 }
 0x55c   : > { %1456 = vrot.lane.b32.xlu0 %v4014_v14, %s3784_s29 }
 0x560   : > { %1547 = vrot.lane.b32.xlu0 %v4025_v19, %s3784_s29  ;;  %s3710_s29 = sshll.u32 %s3792_s14, 4  ;;  %s3711_s29 = int_to_ptr.vmem [resolvable:$false] %s3710_s29 }
 0x5cf   : > { %v1270_v61 = vpop.xlane.xlu1 %1269 }
 0x5d0   : > { %3620 = vrcp.f32 %v1270_v61 }
 0x5d3   : > { %v1273_v62 = vpop.xlane.xlu0 %1272  ;;  %v1550_v9 = vpop.permute.xlu1 %1549 }
 0x5d4   : > { %3622 = vrcp.f32 %v1273_v62 }
 0x5d7   : > { %v1457_v63 = vpop.permute.xlu0 %1456 }
 0x5d8   : > { %3194 = vmatprep.mubr.msk.f32.mxu0 %vm648_vm1, %v1457_v63 }
 0x5d9   : > { %3195 = vmatmul.mubr.msk.f32.vlgmr.msra.gmra.mrb[4].mxu0 %vm648_vm1, %v1459_v60 }
 0x5da   : > { %v3621_v2 = vpop.eup %3620 }
 0x5db   : > { %v1279_v4 = vmul.f32 %v3621_v2, %v3615_v52  ;;  %v1548_v8 = vpop.permute.xlu0 %1547 }
 0x5dd   : > { %3187 = vmatprep.mubr.msk.f32.mxu1 %vm829_vm6, %v1279_v4 }
 0x5de   : > { %v3623_v6 = vpop.eup %3622 }
 0x5df   : > { %v1281_v7 = vmul.f32 %v3623_v6, %v3617_v56 }
 0x5e1   : > { %3188 = vmatmul.mubr.msk.f32.vlgmr.msra.gmra.mrb[14].mxu1 %vm829_vm6, %v1281_v7 }
 0x5e2   : > { %3371 = vmatpush3.bf16.xpose.msk.msra.mxu1 %vm4034_vm2, %v3366_v55  ;;  %3201 = vmatprep.mubr.msk.f32.mxu1 %vm648_vm1, %v1548_v8 }
 0x5e9   : > { %3202 = vmatmul.mubr.msk.f32.vlgmr.msra.gmra.mrb[16].mxu1 %vm648_vm1, %v1550_v9 }
 0x61b   : > { %v4156_v10 = vpop.f32.mrb[2].mxu0 }
 0x61c   : > { %v4158_v11 = vpop.f32.mrb[3].mxu0 }
 0x6ac   : > { %v3196_v13 = vpop.f32.mrb[4].mxu0 }
 0x6ad   : > { %v1639_v16 = vmul.f32 0.35355338, %v3196_v13  ;;  %v1538_v18 = vpop.f32.mrb[5].mxu0 }
 0x6ae   : > { %v1638_v21 = vmul.f32 0.35355338, %v1538_v18 }
 0x6af   : > { %v1643_v22 = vsel %vm640_vm5, -1e+09, %v1639_v16 }
 0x6b0   : > { %v1649_v23 = vsel %vm829_vm6, %v1643_v22, -inf  ;;  %v1642_v25 = vsel %vm640_vm5, -1e+09, %v1638_v21 }
 0x6b1   : > { %1650 = vmax.xlane.f32.xlu1 %v1649_v23  ;;  %v1646_v26 = vsel %vm829_vm6, %v1642_v25, -inf }
 0x6b2   : > { %1647 = vmax.xlane.f32.xlu0 %v1646_v26 }
 0x6b4   : > { %v4166_v27 = vpop.f32.mrb[14].mxu1 }
 0x6b5   : > { %v4168_v28 = vpop.f32.mrb[15].mxu1 }
 0x6bc   : > { %v3203_v29 = vpop.f32.mrb[16].mxu1 }
 0x6bd   : > { %v1629_v30 = vpop.f32.mrb[17].mxu1  ;;  %v1641_v31 = vmul.f32 0.35355338, %v3203_v29 }
 0x6be   : > { %v1640_v32 = vmul.f32 0.35355338, %v1629_v30 }
 0x6bf   : > { %v1645_v35 = vsel %vm641_vm7, -1e+09, %v1641_v31 }
 0x6c0   : > { %v1644_v33 = vsel %vm641_vm7, -1e+09, %v1640_v32  ;;  %v1655_v36 = vsel %vm829_vm6, %v1645_v35, -inf }
 0x6c1   : > { %v1652_v34 = vsel %vm829_vm6, %v1644_v33, -inf }
 0x6c2   : > { %1653 = vmax.xlane.f32.xlu0 %v1652_v34 }
 0x6c6   : > { %1656 = vmax.xlane.f32.xlu0 %v1655_v36 }
 0x73e   : > { %v1651_v38 = vpop.xlane.xlu1 %1650 }
 0x73f   : > { %v1659_v39 = vsub.f32 %v1643_v22, %v1651_v38  ;;  %v1648_v40 = vpop.xlane.xlu0 %1647 }
 0x740   : > { %v1658_v41 = vsub.f32 %v1642_v25, %v1648_v40 }
 0x741   : > { %v1664_v42 = vmul.f32 1.442695, %v1659_v39 }
 0x742   : > { %v1662_v43 = vmul.f32 1.442695, %v1658_v41 }
 0x743   : > { %3624 = vpow2.f32 %v1664_v42 }
 0x744   : > { %3626 = vpow2.f32 %v1662_v43 }
 0x74d   : > { %v3625_v45 = vpop.eup %3624 }
 0x74e   : > { %v3627_v46 = vpop.eup %3626  ;;  %v1673_v47 = vsel %vm829_vm6, %v3625_v45, 0.0 }
 0x74f   : > { %1674 = vadd.xlane.f32.xlu0 %v1673_v47  ;;  %v1670_v48 = vsel %vm829_vm6, %v3627_v46, 0.0  ;;  %v1654_v49 = vpop.xlane.xlu0 %1653 }
 0x750   : > { %1671 = vadd.xlane.f32.xlu1 %v1670_v48  ;;  %v1660_v53 = vsub.f32 %v1644_v33, %v1654_v49 }
 0x752   : > { %v1666_v54 = vmul.f32 1.442695, %v1660_v53 }
 0x753   : > { %v1657_v50 = vpop.xlane.xlu0 %1656 }
 0x754   : > { %v1661_v51 = vsub.f32 %v1645_v35, %v1657_v50 }
 0x756   : > { %v1668_v52 = vmul.f32 1.442695, %v1661_v51 }
 0x758   : > { %3628 = vpow2.f32 %v1668_v52 }
 0x759   : > { %3630 = vpow2.f32 %v1666_v54 }
 0x761   : > { %3563 = vrot.lane.b32.xlu1 %v4020_v15, %s3785_s15 }
 0x762   : > { %v3629_v55 = vpop.eup %3628 }
 0x763   : > { %v1679_v56 = vsel %vm829_vm6, %v3629_v55, 0.0  ;;  %v3631_v57 = vpop.eup %3630 }
 0x764   : > { %v1676_v58 = vsel %vm829_vm6, %v3631_v57, 0.0 }
 0x765   : > { %3573 = vrot.lane.b32.xlu1 %v4020_v15, %s3786_s19  ;;  %3568 = vrot.lane.b32.xlu0 %v4029_v20, %s3785_s15 }
 0x769   : > { %3578 = vrot.lane.b32.xlu1 %v4029_v20, %s3786_s19  ;;  %s3011_s19 = sshll.u32 %s3890_s17, 9 }
 0x76d   : > { %1866 = vrot.lane.b32.xlu1 %v4012_v12, %s3787_s22 }
 0x784   : > { %1680 = vadd.xlane.f32.xlu0 %v1679_v56 }
 0x791   : > { %1677 = vadd.xlane.f32.xlu1 %v1676_v58 }
 0x79a   : > { %1864 = vrot.lane.b32.xlu0 %v4014_v14, %s3787_s22 }
 0x79e   : > { %1955 = vrot.lane.b32.xlu0 %v4025_v19, %s3787_s22 }
 0x7a2   : > { %1957 = vrot.lane.b32.xlu1 %v4022_v17, %s3787_s22 }
 0x7dc   : > { %v1675_v12 = vpop.xlane.xlu0 %1674 }
 0x7dd   : > { %3632 = vrcp.f32 %v1675_v12  ;;  %v1672_v59 = vpop.xlane.xlu1 %1671 }
 0x7de   : > { %3634 = vrcp.f32 %v1672_v59 }
 0x7e0   : > { %v3569_v60 = vpop.permute.xlu0 %3568 }
 0x7e1   : > { %v3571_v61 = vunpack.i.h.bf16 %v3569_v60  ;;  %v3570_v62 = vunpack.i.l.bf16 %v3569_v60  ;;  %v3564_v63 = vpop.permute.xlu1 %3563 }
 0x7e2   : > { %v3566_v2 = vunpack.i.h.bf16 %v3564_v63  ;;  %v3565_v4 = vunpack.i.l.bf16 %v3564_v63 }
 0x7e3   : > { %v3376_v6 = vpack.c.bf16 %v3571_v61, %v3570_v62 }
 0x7e4   : > { %v3372_v7 = vpack.c.bf16 %v3566_v2, %v3565_v4 }
 0x7e5   : > { %v3574_v8 = vpop.permute.xlu1 %3573  ;;  %3377 = vmatprep.subr.bf16.mxu1 %v3376_v6 }
 0x7e6   : > { %v3576_v9 = vunpack.i.h.bf16 %v3574_v8  ;;  %v3575_v14 = vunpack.i.l.bf16 %v3574_v8  ;;  %3373 = vmatprep.subr.bf16.mxu0 %v3372_v7  ;;  %3379 = vmatpush3.bf16.msra.mxu1 %v3376_v6 }
 0x7e7   : > { %v3633_v19 = vpop.eup %3632  ;;  %3375 = vmatpush3.bf16.msra.mxu0 %v3372_v7 }
 0x7e8   : > { %v3635_v17 = vpop.eup %3634  ;;  %v3380_v13 = vpack.c.bf16 %v3576_v9, %v3575_v14  ;;  %v1685_v21 = vmul.f32 %v3633_v19, %v3625_v45 }
 0x7e9   : > { %v3579_v16 = vpop.permute.xlu1 %3578  ;;  %v1683_v18 = vmul.f32 %v3635_v17, %v3627_v46 }
 0x7ea   : > { %v3581_v22 = vunpack.i.h.bf16 %v3579_v16  ;;  %v3580_v23 = vunpack.i.l.bf16 %v3579_v16  ;;  %3382 = vmatprep.subr.msk.bf16.mxu0 %vm4034_vm2, %v3380_v13 }
 0x7eb   : > { %3208 = vmatprep.mubr.msk.f32.mxu0 %vm829_vm6, %v1683_v18 }
 0x7ec   : > { %v3386_v25 = vpack.c.bf16 %v3581_v22, %v3580_v23  ;;  %3209 = vmatmul.mubr.msk.f32.vlgmr.msra.gmra.mrb[6].mxu0 %vm829_vm6, %v1685_v21 }
 0x7ed   : > { %v1867_v30 = vpop.permute.xlu1 %1866 }
 0x7ee   : > { %3388 = vmatprep.subr.msk.bf16.mxu1 %vm4034_vm2, %v3386_v25 }
 0x7f0   : > { %3385 = vmatpush3.bf16.xpose.msk.msra.mxu0 %vm4034_vm2, %v3380_v13 }
 0x811   : > { %v1681_v26 = vpop.xlane.xlu0 %1680 }
 0x812   : > { %3636 = vrcp.f32 %v1681_v26 }
 0x815   : > { %v1865_v29 = vpop.permute.xlu0 %1864 }
 0x816   : > { %3222 = vmatprep.mubr.msk.f32.mxu0 %vm648_vm1, %v1865_v29 }
 0x817   : > { %3223 = vmatmul.mubr.msk.f32.vlgmr.msra.gmra.mrb[8].mxu0 %vm648_vm1, %v1867_v30 }
 0x819   : > { %v1956_v36 = vpop.permute.xlu0 %1955 }
 0x81c   : > { %v3637_v32 = vpop.eup %3636 }
 0x81d   : > { %v1689_v35 = vmul.f32 %v3637_v32, %v3629_v55 }
 0x81e   : > { %v1678_v31 = vpop.xlane.xlu1 %1677 }
 0x81f   : > { %3638 = vrcp.f32 %v1678_v31 }
 0x822   : > { %v1958_v38 = vpop.permute.xlu1 %1957 }
 0x829   : > { %v3639_v33 = vpop.eup %3638 }
 0x82a   : > { %v1687_v34 = vmul.f32 %v3639_v33, %v3631_v57 }
 0x82c   : > { %3215 = vmatprep.mubr.msk.f32.mxu1 %vm829_vm6, %v1687_v34 }
 0x82d   : > { %3216 = vmatmul.mubr.msk.f32.vlgmr.msra.gmra.mrb[18].mxu1 %vm829_vm6, %v1689_v35 }
 0x82e   : > { %3391 = vmatpush3.bf16.xpose.msk.msra.mxu1 %vm4034_vm2, %v3386_v25  ;;  %3229 = vmatprep.mubr.msk.f32.mxu1 %vm648_vm1, %v1956_v36 }
 0x835   : > { %3230 = vmatmul.mubr.msk.f32.vlgmr.msra.gmra.mrb[20].mxu1 %vm648_vm1, %v1958_v38 }
 0x8bf   : > { %v3210_v39 = vpop.f32.mrb[6].mxu0 }
 0x8c0   : > { %v1768_v40 = vpop.f32.mrb[7].mxu0 }
 0x8ea   : > { %v3224_v41 = vpop.f32.mrb[8].mxu0 }
 0x8eb   : > { %v2047_v42 = vmul.f32 0.35355338, %v3224_v41  ;;  %v1946_v43 = vpop.f32.mrb[9].mxu0  ;;  %v2333_v41 = vld [vmem:[%s4461_s4] sm:$0xff] }
 0x8ec   : > { %v2046_v45 = vmul.f32 0.35355338, %v1946_v43  ;;  %v2335_v43 = vld [vmem:[%s4461_s4 + $0x10] sm:$0xff] }
 0x8ed   : > { %v2051_v46 = vsel %vm640_vm5, -1e+09, %v2047_v42  ;;  %v2334_v42 = vld [vmem:[%s4461_s4 + $0x8] sm:$0xff] }
 0x8ee   : > { %v2057_v47 = vsel %vm829_vm6, %v2051_v46, -inf  ;;  %v2050_v24 = vsel %vm640_vm5, -1e+09, %v2046_v45  ;;  %v3400_v45 = vpack.c.bf16 %v2334_v42, %v2333_v41 }
 0x8ef   : > { %2058 = vmax.xlane.f32.xlu1 %v2057_v47  ;;  %v2054_v48 = vsel %vm829_vm6, %v2050_v24, -inf }
 0x8f0   : > { %2055 = vmax.xlane.f32.xlu0 %v2054_v48 }
 0x900   : > { %v4210_v49 = vpop.f32.mrb[18].mxu1 }
 0x901   : > { %v4212_v50 = vpop.f32.mrb[19].mxu1 }
 0x908   : > { %v3231_v51 = vpop.f32.mrb[20].mxu1 }
 0x909   : > { %v2037_v52 = vpop.f32.mrb[21].mxu1  ;;  %v2049_v53 = vmul.f32 0.35355338, %v3231_v51 }
 0x90a   : > { %v2048_v54 = vmul.f32 0.35355338, %v2037_v52 }
 0x90b   : > { %v2053_v37 = vsel %vm641_vm7, -1e+09, %v2049_v53 }
 0x90c   : > { %v2052_v55 = vsel %vm641_vm7, -1e+09, %v2048_v54  ;;  %v2063_v57 = vsel %vm829_vm6, %v2053_v37, -inf }
 0x90d   : > { %v2060_v56 = vsel %vm829_vm6, %v2052_v55, -inf }
 0x90e   : > { %2061 = vmax.xlane.f32.xlu0 %v2060_v56 }
 0x912   : > { %2064 = vmax.xlane.f32.xlu0 %v2063_v57 }
 0x97c   : > { %v2059_v58 = vpop.xlane.xlu1 %2058 }
 0x97d   : > { %v2067_v12 = vsub.f32 %v2051_v46, %v2059_v58  ;;  %v2056_v59 = vpop.xlane.xlu0 %2055  ;;  %v2336_v46 = vld [vmem:[%s4461_s4 + $0x18] sm:$0xff] }
 0x97e   : > { %v2066_v60 = vsub.f32 %v2050_v24, %v2056_v59  ;;  %v3404_v47 = vpack.c.bf16 %v2336_v46, %v2335_v43 }
 0x97f   : > { %v2072_v61 = vmul.f32 1.442695, %v2067_v12 }
 0x980   : > { %v2070_v62 = vmul.f32 1.442695, %v2066_v60 }
 0x981   : > { %3640 = vpow2.f32 %v2072_v61 }
 0x982   : > { %3642 = vpow2.f32 %v2070_v62 }
 0x98b   : > { %v3641_v63 = vpop.eup %3640 }
 0x98c   : > { %v3643_v2 = vpop.eup %3642  ;;  %v2081_v4 = vsel %vm829_vm6, %v3641_v63, 0.0 }
 0x98d   : > { %2082 = vadd.xlane.f32.xlu0 %v2081_v4  ;;  %v2078_v6 = vsel %vm829_vm6, %v3643_v2, 0.0 }
 0x98e   : > { %2079 = vadd.xlane.f32.xlu1 %v2078_v6 }
 0x99b   : > { %v2062_v44 = vpop.xlane.xlu0 %2061 }
 0x99c   : > { %v2068_v7 = vsub.f32 %v2052_v55, %v2062_v44 }
 0x99e   : > { %v2074_v8 = vmul.f32 1.442695, %v2068_v7 }
 0x99f   : > { %v2065_v9 = vpop.xlane.xlu0 %2064 }
 0x9a0   : > { %3644 = vpow2.f32 %v2074_v8  ;;  %v2069_v14 = vsub.f32 %v2053_v37, %v2065_v9 }
 0x9a2   : > { %v2076_v19 = vmul.f32 1.442695, %v2069_v14 }
 0x9a4   : > { %3646 = vpow2.f32 %v2076_v19  ;;  %v3672_v19 = vld [vmem:[%s3987_s21 + $0x8] sm:$0xff] }
 0x9aa   : > { %v3645_v17 = vpop.eup %3644 }
 0x9ab   : > { %v2084_v13 = vsel %vm829_vm6, %v3645_v17, 0.0 }
 0x9ac   : > { %2085 = vadd.xlane.f32.xlu1 %v2084_v13  ;;  %v3673_v13 = vld [vmem:[%s3987_s21] sm:$0xff] }
 0x9ae   : > { %v3647_v16 = vpop.eup %3646 }
 0x9af   : > { %v2087_v18 = vsel %vm829_vm6, %v3647_v16, 0.0 }
 0x9b0   : > { %2088 = vadd.xlane.f32.xlu0 %v2087_v18 }
 0x9bd   : > { %3583 = vrot.lane.b32.xlu1 %v4020_v15, %s3788_s20 }
 0x9c1   : > { %2276 = vrot.lane.b32.xlu1 %v4158_v11, %s3789_s23 }
 0x9c5   : > { %2278 = vrot.lane.b32.xlu1 %v4156_v10, %s3789_s23 }
 0x9c6   : > { %3588 = vrot.lane.b32.xlu0 %v4029_v20, %s3788_s20 }
 0x9c9   : > { %2294 = vrot.lane.b32.xlu1 %v3210_v39, %s3790_s24 }
 0x9ca   : > { %2292 = vrot.lane.b32.xlu0 %v1768_v40, %s3790_s24 }
 0xa1a   : > { %v2083_v15 = vpop.xlane.xlu0 %2082 }
 0xa1b   : > { %v2080_v21 = vpop.xlane.xlu1 %2079 }
 0xa1c   : > { %3648 = vrcp.f32 %v2080_v21 }
 0xa1d   : > { %3650 = vrcp.f32 %v2083_v15 }
 0xa26   : > { %v3649_v22 = vpop.eup %3648 }
 0xa27   : > { %v2091_v23 = vmul.f32 %v3649_v22, %v3643_v2  ;;  %v3651_v30 = vpop.eup %3650 }
 0xa28   : > { %v2093_v35 = vmul.f32 %v3651_v30, %v3641_v63 }
 0xa29   : > { %3236 = vmatprep.mubr.msk.f32.mxu0 %vm829_vm6, %v2091_v23 }
 0xa39   : > { %v2086_v25 = vpop.xlane.xlu1 %2085 }
 0xa3a   : > { %3652 = vrcp.f32 %v2086_v25 }
 0xa3d   : > { %v3584_v11 = vpop.permute.xlu1 %3583  ;;  %v2089_v26 = vpop.xlane.xlu0 %2088 }
 0xa3e   : > { %v3586_v10 = vunpack.i.h.bf16 %v3584_v11  ;;  %v3585_v29 = vunpack.i.l.bf16 %v3584_v11  ;;  %3654 = vrcp.f32 %v2089_v26  ;;  %v3674_v11 = vld [vmem:[%s3987_s21 + $0x10] sm:$0xff] }
 0xa40   : > { %v3392_v20 = vpack.c.bf16 %v3586_v10, %v3585_v29  ;;  %v3675_v29 = vld [vmem:[%s3987_s21 + $0x18] sm:$0xff]  ;;  %s2930_s21 = sshll.u32 %s3973_s18, 5 }
 0xa41   : > { %v3589_v31 = vpop.permute.xlu0 %3588  ;;  %v2277_v53 = vpop.permute.xlu1 %2276  ;;  %s503_s15 = scalar_lea.vmem [#allocation5], %s2930_s21 }
 0xa42   : > { %v3591_v32 = vunpack.i.h.bf16 %v3589_v31  ;;  %v3590_v33 = vunpack.i.l.bf16 %v3589_v31  ;;  %3393 = vmatprep.subr.bf16.mxu0 %v3392_v20  ;;  %s2837_s22 = sshll.u32 %s503_s15, 4  ;;  %s4410_s22 = int_to_ptr.vmem [resolvable:$true] %s2837_s22 }
 0xa43   : > { %3395 = vmatpush3.bf16.msra.mxu0 %v3392_v20  ;;  %s3706_s21 = scalar_lea.vmem %s4410_s22, 512  ;;  %p3713_p10 = scmp.lt.s32.totalorder %s4410_s22, %s3711_s29 }
 0xa44   : > { %v3653_v34 = vpop.eup %3652  ;;  %v3396_v36 = vpack.c.bf16 %v3591_v32, %v3590_v33  ;;  %3401 = vmatprep.subr.bf16.mxu0 %v3400_v45  ;;  %p3707_p6 = scmp.ne.s32.totalorder %s4410_s22, %s3706_s21 }
 0xa45   : > { %v2095_v38 = vmul.f32 %v3653_v34, %v3645_v17  ;;  %v2279_v54 = vpop.permute.xlu1 %2278  ;;  %v2293_v56 = vpop.permute.xlu0 %2292 }
 0xa46   : > { %3237 = vmatmul.mubr.msk.f32.vlgmr.msra.gmra.mrb[10].mxu0 %vm829_vm6, %v2093_v35  ;;  %3397 = vmatprep.subr.bf16.mxu1 %v3396_v36  ;;  %p3708_p13 = pnand %p3707_p6, %p4491_p12 }
 0xa47   : > { %3399 = vmatpush3.bf16.msra.mxu1 %v3396_v36  ;;  %3243 = vmatprep.mubr.msk.f32.mxu1 %vm829_vm6, %v2095_v38 }
 0xa48   : > { %v3655_v39 = vpop.eup %3654  ;;  %3403 = vmatpush3.bf16.msra.mxu0 %v3400_v45  ;;  %p3709_p8 = pneg %p3708_p13 }
 0xa49   : > { %v2097_v40 = vmul.f32 %v3655_v39, %v3647_v16  ;;  %3405 = vmatprep.subr.bf16.mxu0 %v3404_v47  ;;  %v2295_v55 = vpop.permute.xlu1 %2294 }
 0xa4b   : > { %3244 = vmatmul.mubr.msk.f32.vlgmr.msra.gmra.mrb[22].mxu1 %vm829_vm6, %v2097_v40 }
 0xa4c   : > { %3407 = vmatpush3.bf16.msra.mxu0 %v3404_v47 }
 0xb19   : > { %v3238_v24 = vpop.f32.mrb[10].mxu0 }
 0xb1a   : > { %2310 = vrot.lane.b32.xlu1 %v3238_v24, %s3791_s27  ;;  %v2176_v48 = vpop.f32.mrb[11].mxu0 }
 0xb1b   : > { %2308 = vrot.lane.b32.xlu0 %v2176_v48, %s3791_s27 }
 0xb1e   : > { %2282 = vrot.lane.b32.xlu1 %v4166_v27, %s3789_s23  ;;  %v3245_v51 = vpop.f32.mrb[22].mxu1  ;;  %v2320_v27 = vsel %vm648_vm1, %v4112_v1, %v2277_v53 }
 0xb1f   : > { %2280 = vrot.lane.b32.xlu0 %v4168_v28, %s3789_s23  ;;  %v2263_v52 = vpop.f32.mrb[23].mxu1  ;;  %v2321_v28 = vsel %vm648_vm1, %v4110_v0, %v2279_v54  ;;  %v2324_v57 = vsel %vm829_vm6, %v2320_v27, %v2293_v56  ;;  %v2520_v54 = vld [vmem:[%s4465_s8] sm:$0xff]  ;;  %v2522_v27 = vld [vmem:[%s4465_s8 + $0x10] sm:$0xff] }
 0xb20   : > { %v2325_v58 = vsel %vm829_vm6, %v2321_v28, %v2295_v55  ;;  %v2521_v55 = vld [vmem:[%s4465_s8 + $0x8] sm:$0xff] }
 0xb21   : > { %v3408_v56 = vpack.c.bf16 %v2521_v55, %v2520_v54 }
 0xb22   : > { %2298 = vrot.lane.b32.xlu1 %v4210_v49, %s3790_s24 }
 0xb23   : > { %2296 = vrot.lane.b32.xlu0 %v4212_v50, %s3790_s24  ;;  %3409 = vmatprep.subr.bf16.mxu1 %v3408_v56  ;;  %s4490_s24 = sld [smem:[#allocation12_spill]] }
 0xb24   : > { %3411 = vmatpush3.bf16.msra.mxu1 %v3408_v56 }
 0xb26   : > { %2314 = vrot.lane.b32.xlu1 %v3245_v51, %s3791_s27 }
 0xb27   : > { %2312 = vrot.lane.b32.xlu0 %v2263_v52, %s3791_s27 }
 0xb29   : > { %s4408_s28 = scalar_lea.hbm %s4490_s24, %s3011_s19  ;;  %s3712_s19 = scalar_lea.vmem %s3711_s29, 1024 }
 0xb2a   : > { %p3714_p0 = scmp.lt.s32.totalorder %s3712_s19, %s3706_s21 }
 0xb2c   : > { %p3715_p2 = por %p3714_p0, %p3713_p10 }
 0xb2e   : > { %p3716_p4 = pnand %p3715_p2, %p3709_p8 }
 0xb8c   : > { %v2311_v37 = vpop.permute.xlu1 %2310 }
 0xb8d   : > { %v2309_v49 = vpop.permute.xlu0 %2308  ;;  %v2330_v12 = vsel %vm2328_vm8, %v2325_v58, %v2311_v37  ;;  %v2523_v37 = vld [vmem:[%s4465_s8 + $0x18] sm:$0xff]  ;;  %v2634_v58 = vld [vmem:[%s4467_s10 + $0x10] sm:$0xff] }
 0xb8e   : > { %v2329_v50 = vsel %vm2328_vm8, %v2324_v57, %v2309_v49  ;;  %v3412_v28 = vpack.c.bf16 %v2523_v37, %v2522_v27  ;;  %v2632_v57 = vld [vmem:[%s4467_s10] sm:$0xff]  ;;  %v2633_v49 = vld [vmem:[%s4467_s10 + $0x8] sm:$0xff] }
 0xb8f   : > { %3254 = vmatprep.mubr.msk.f32.mxu0 %vm528_vm0, %v2329_v50  ;;  %v3416_v50 = vpack.c.bf16 %v2633_v49, %v2632_v57 }
 0xb90   : > { %v2283_v59 = vpop.permute.xlu1 %2282  ;;  %3255 = vmatmul.mubr.msk.f32.vlgmr.msra.gmra.mrb[12].mxu0 %vm528_vm0, %v2330_v12  ;;  %3413 = vmatprep.subr.bf16.mxu1 %v3412_v28  ;;  %v2635_v12 = vld [vmem:[%s4467_s10 + $0x18] sm:$0xff] }
 0xb91   : > { %v2281_v60 = vpop.permute.xlu0 %2280  ;;  %v2323_v63 = vsel %vm648_vm1, %v4114_v3, %v2283_v59  ;;  %3415 = vmatpush3.bf16.msra.mxu1 %v3412_v28  ;;  %v3420_v59 = vpack.c.bf16 %v2635_v12, %v2634_v58  ;;  %3417 = vmatprep.subr.bf16.mxu0 %v3416_v50 }
 0xb92   : > { %v2322_v0 = vsel %vm648_vm1, %v4116_v5, %v2281_v60  ;;  %v2987_v5 = vld [vmem:[%s4462_s5] ss:$0 sm:$0xff]  ;;  %3419 = vmatpush3.bf16.msra.mxu0 %v3416_v50 }
 0xb93   : > { %v2636_v60 = vld [vmem:[%s4467_s10 + $0x20] sm:$0xff]  ;;  %3421 = vmatprep.subr.bf16.mxu0 %v3420_v59 }
 0xb94   : > { %v2299_v1 = vpop.permute.xlu1 %2298  ;;  %v2999_v50 = vld [vmem:[%s4468_s11] ss:$0 sm:$0xff] }
 0xb95   : > { %v2297_v61 = vpop.permute.xlu0 %2296  ;;  %v2327_v6 = vsel %vm829_vm6, %v2323_v63, %v2299_v1  ;;  %v2637_v1 = vld [vmem:[%s4467_s10 + $0x28] sm:$0xff] }
 0xb96   : > { %v2326_v2 = vsel %vm829_vm6, %v2322_v0, %v2297_v61  ;;  %v3424_v61 = vpack.c.bf16 %v2637_v1, %v2636_v60  ;;  %v2638_v0 = vld [vmem:[%s4467_s10 + $0x30] sm:$0xff]  ;;  %3423 = vmatpush3.bf16.msra.mxu0 %v3420_v59 }
 0xb98   : > { %v2315_v62 = vpop.permute.xlu1 %2314  ;;  %3425 = vmatprep.subr.bf16.mxu0 %v3424_v61 }
 0xb99   : > { %v2313_v4 = vpop.permute.xlu0 %2312  ;;  %v2332_v7 = vsel %vm2328_vm8, %v2327_v6, %v2315_v62  ;;  %v2639_v62 = vld [vmem:[%s4467_s10 + $0x38] sm:$0xff] }
 0xb9a   : > { %v2331_v44 = vsel %vm2328_vm8, %v2326_v2, %v2313_v4  ;;  %v3428_v63 = vpack.c.bf16 %v2639_v62, %v2638_v0  ;;  %v2640_v2 = vld [vmem:[%s4467_s10 + $0x40] sm:$0xff]  ;;  %v2641_v4 = vld [vmem:[%s4467_s10 + $0x48] sm:$0xff]  ;;  %3427 = vmatpush3.bf16.msra.mxu0 %v3424_v61 }
 0xb9b   : > { %3257 = vmatprep.mubr.msk.f32.mxu0 %vm528_vm0, %v2331_v44  ;;  %v3432_v6 = vpack.c.bf16 %v2641_v4, %v2640_v2  ;;  %v2642_v44 = vld [vmem:[%s4467_s10 + $0x50] sm:$0xff] }
 0xb9c   : > { %3258 = vmatmul.mubr.msk.f32.gmra.mrb[14].mxu0 %vm528_vm0, %v2332_v7  ;;  %3429 = vmatprep.subr.bf16.mxu0 %v3428_v63  ;;  %v2643_v7 = vld [vmem:[%s4467_s10 + $0x58] sm:$0xff] }
 0xb9e   : > { %3431 = vmatpush3.bf16.msra.mxu0 %v3428_v63 }
 0xb9f   : > { %3433 = vmatprep.subr.bf16.mxu0 %v3432_v6 }
 0xba2   : > { %3435 = vmatpush3.bf16.msra.mxu0 %v3432_v6 }
 0xc63   : > { %v3256_v8 = vpop.f32.mrb[12].mxu0 }
 0xc64   : > { %v2428_v3 = vadd.f32 %v3256_v8, %v2987_v5  ;;  %v2422_v9 = vpop.f32.mrb[13].mxu0  ;;  %v2644_v8 = vld [vmem:[%s4467_s10 + $0x60] sm:$0xff] }
 0xc65   : > { %v2423_v14 = vadd.f32 %v2987_v5, %v2422_v9 }
 0xc66   : > { %v2442_v17 = vadd.f32 %v3672_v19, %v2428_v3  ;;  %v2645_v3 = vld [vmem:[%s4467_s10 + $0x68] sm:$0xff] }
 0xc67   : > { %v2441_v16 = vadd.f32 %v3673_v13, %v2423_v14  ;;  %v3440_v9 = vpack.c.bf16 %v2645_v3, %v2644_v8 }
 0xc68   : > { %v2450_v18 = vsel %vm528_vm0, %v2442_v17, 0.0 }
 0xc69   : > { %2451 = vadd.xlane.f32.xlu1 %v2450_v18  ;;  %v2447_v21 = vsel %vm528_vm0, %v2441_v16, 0.0 }
 0xc6a   : > { %2448 = vadd.xlane.f32.xlu0 %v2447_v21 }
 0xc6f   : > { %v3259_v22 = vpop.f32.mrb[14].mxu0 }
 0xc70   : > { %v2432_v23 = vpop.f32.mrb[15].mxu0  ;;  %v2438_v15 = vadd.f32 %v3259_v22, %v2987_v5 }
 0xc71   : > { %v2433_v25 = vadd.f32 %v2987_v5, %v2432_v23  ;;  %v3436_v5 = vpack.c.bf16 %v2643_v7, %v2642_v44 }
 0xc72   : > { %v2444_v20 = vadd.f32 %v3675_v29, %v2438_v15  ;;  %v2992_v15 = vld [vmem:[%s4463_s6] ss:$0 sm:$0xff] }
 0xc73   : > { %v2443_v26 = vadd.f32 %v3674_v11, %v2433_v25  ;;  %3437 = vmatprep.subr.bf16.mxu0 %v3436_v5 }
 0xc74   : > { %v2456_v30 = vsel %vm528_vm0, %v2444_v20, 0.0  ;;  %3439 = vmatpush3.bf16.msra.mxu0 %v3436_v5 }
 0xc75   : > { %v2453_v10 = vsel %vm528_vm0, %v2443_v26, 0.0  ;;  %3441 = vmatprep.subr.bf16.mxu0 %v3440_v9 }
 0xc76   : > { %2454 = vadd.xlane.f32.xlu0 %v2453_v10 }
 0xc78   : > { %3443 = vmatpush3.bf16.msra.mxu0 %v3440_v9 }
 0xc7a   : > { %2457 = vadd.xlane.f32.xlu0 %v2456_v30  ;;  %v2993_v30 = vld [vmem:[%s4464_s7] ss:$0 sm:$0xff] }
 0xcf6   : > { %v2452_v31 = vpop.xlane.xlu1 %2451 }
 0xcf7   : > { %v2461_v32 = vmul.f32 0.03125, %v2452_v31  ;;  %v2449_v33 = vpop.xlane.xlu0 %2448 }
 0xcf8   : > { %v2460_v34 = vmul.f32 0.03125, %v2449_v33 }
 0xcf9   : > { %v4287_v35 = vsub.f32 %v2442_v17, %v2461_v32 }
 0xcfa   : > { %v4289_v36 = vsub.f32 %v2441_v16, %v2460_v34 }
 0xcfb   : > { %v2469_v38 = vmul.f32 %v4287_v35, %v4287_v35 }
 0xcfc   : > { %v2468_v39 = vmul.f32 %v4289_v36, %v4289_v36 }
 0xcfd   : > { %v2475_v40 = vsel %vm528_vm0, %v2469_v38, 0.0 }
 0xcfe   : > { %2476 = vadd.xlane.f32.xlu0 %v2475_v40  ;;  %v2472_v41 = vsel %vm528_vm0, %v2468_v39, 0.0 }
 0xcff   : > { %2473 = vadd.xlane.f32.xlu1 %v2472_v41 }
 0xd03   : > { %v2455_v42 = vpop.xlane.xlu0 %2454 }
 0xd04   : > { %v2462_v43 = vmul.f32 0.03125, %v2455_v42 }
 0xd06   : > { %v4297_v45 = vsub.f32 %v2443_v26, %v2462_v43 }
 0xd07   : > { %v2458_v46 = vpop.xlane.xlu0 %2457 }
 0xd08   : > { %v2463_v47 = vmul.f32 0.03125, %v2458_v46  ;;  %v2470_v24 = vmul.f32 %v4297_v45, %v4297_v45 }
 0xd0a   : > { %v4301_v48 = vsub.f32 %v2444_v20, %v2463_v47  ;;  %v2478_v51 = vsel %vm528_vm0, %v2470_v24, 0.0  ;;  %v2646_v47 = vld [vmem:[%s4467_s10 + $0x70] sm:$0xff]  ;;  %v2647_v24 = vld [vmem:[%s4467_s10 + $0x78] sm:$0xff] }
 0xd0b   : > { %2479 = vadd.xlane.f32.xlu1 %v2478_v51 }
 0xd0c   : > { %v2471_v52 = vmul.f32 %v4301_v48, %v4301_v48 }
 0xd0e   : > { %v2481_v53 = vsel %vm528_vm0, %v2471_v52, 0.0 }
 0xd0f   : > { %2482 = vadd.xlane.f32.xlu0 %v2481_v53 }
 0xd8b   : > { %v2477_v14 = vpop.xlane.xlu0 %2476 }
 0xd8c   : > { %v2485_v19 = vmul.f32 0.03125, %v2477_v14  ;;  %v2474_v17 = vpop.xlane.xlu1 %2473 }
 0xd8d   : > { %v2484_v13 = vmul.f32 0.03125, %v2474_v17 }
 0xd8e   : > { %v2489_v16 = vadd.f32 1e-05, %v2485_v19 }
 0xd8f   : > { %v2488_v18 = vadd.f32 1e-05, %v2484_v13 }
 0xd90   : > { %3656 = vrsqrt.f32 %v2489_v16 }
 0xd91   : > { %3658 = vrsqrt.f32 %v2488_v18 }
 0xd98   : > { %v2480_v21 = vpop.xlane.xlu1 %2479 }
 0xd99   : > { %v2486_v22 = vmul.f32 0.03125, %v2480_v21 }
 0xd9a   : > { %v3657_v23 = vpop.eup %3656 }
 0xd9b   : > { %v3659_v25 = vpop.eup %3658  ;;  %v2497_v11 = vmul.f32 %v3657_v23, %v4287_v35  ;;  %v2490_v26 = vadd.f32 1e-05, %v2486_v22 }
 0xd9c   : > { %v2483_v10 = vpop.xlane.xlu0 %2482  ;;  %v2496_v29 = vmul.f32 %v3659_v25, %v4289_v36 }
 0xd9d   : > { %3660 = vrsqrt.f32 %v2490_v26  ;;  %v2487_v20 = vmul.f32 0.03125, %v2483_v10  ;;  %v2507_v31 = vmul.f32 %v2992_v15, %v2497_v11 }
 0xd9e   : > { %v2506_v32 = vmul.f32 %v2992_v15, %v2496_v29 }
 0xd9f   : > { %v2491_v33 = vadd.f32 1e-05, %v2487_v20  ;;  %v2517_v38 = vadd.f32 %v2993_v30, %v2507_v31 }
 0xda0   : > { %v2516_v34 = vadd.f32 %v2993_v30, %v2506_v32 }
 0xda1   : > { %3662 = vrsqrt.f32 %v2491_v33 }
 0xda2   : > { %3268 = vmatprep.mubr.msk.f32.mxu1 %vm528_vm0, %v2516_v34 }
 0xda3   : > { %3269 = vmatmul.mubr.msk.f32.vlgmr.msra.gmra.mrb[24].mxu1 %vm528_vm0, %v2517_v38 }
 0xda7   : > { %v3661_v35 = vpop.eup %3660 }
 0xda8   : > { %v2498_v39 = vmul.f32 %v3661_v35, %v4297_v45  ;;  %v3444_v45 = vpack.c.bf16 %v2647_v24, %v2646_v47 }
 0xdaa   : > { %v2508_v36 = vmul.f32 %v2992_v15, %v2498_v39  ;;  %3445 = vmatprep.subr.bf16.mxu0 %v3444_v45 }
 0xdab   : > { %v3663_v40 = vpop.eup %3662  ;;  %3447 = vmatpush3.bf16.msra.mxu0 %v3444_v45  ;;  %v3001_v45 = vld [vmem:[%s4470_s13] ss:$0 sm:$0xff] }
 0xdac   : > { %v2518_v41 = vadd.f32 %v2993_v30, %v2508_v36  ;;  %v2499_v42 = vmul.f32 %v3663_v40, %v4301_v48  ;;  %v2994_v48 = vld [vmem:[%s4466_s9] ss:$0 sm:$0xff] }
 0xdae   : > { %3271 = vmatprep.mubr.msk.f32.mxu1 %vm528_vm0, %v2518_v41  ;;  %v2509_v43 = vmul.f32 %v2992_v15, %v2499_v42 }
 0xdb0   : > { %v2519_v46 = vadd.f32 %v2993_v30, %v2509_v43 }
 0xdb2   : > { %3272 = vmatmul.mubr.msk.f32.gmra.mrb[26].mxu1 %vm528_vm0, %v2519_v46 }
 0xe76   : > { %v3270_v51 = vpop.f32.mrb[24].mxu1 }
 0xe77   : > { %v2615_v52 = vadd.f32 %v3270_v51, %v2994_v48  ;;  %v2609_v53 = vpop.f32.mrb[25].mxu1 }
 0xe78   : > { %v2610_v54 = vadd.f32 %v2994_v48, %v2609_v53 }
 0xe79   : > { %v2629_v56 = vmax.f32 %v2615_v52, 0.0 }
 0xe7a   : > { %v2628_v55 = vmax.f32 %v2610_v54, 0.0 }
 0xe7c   : > { %3306 = vmatprep.mubr.f32.mxu0 %v2628_v55 }
 0xe7d   : > { %3307 = vmatmul.mubr.f32.vlgmr.msra.gmra.mrb[16].mxu0 %v2629_v56 }
 0xe85   : > { %v3273_v27 = vpop.f32.mrb[26].mxu1 }
 0xe86   : > { %v2625_v37 = vadd.f32 %v3273_v27, %v2994_v48  ;;  %v2619_v28 = vpop.f32.mrb[27].mxu1 }
 0xe87   : > { %v2620_v57 = vadd.f32 %v2994_v48, %v2619_v28 }
 0xe88   : > { %v2631_v58 = vmax.f32 %v2625_v37, 0.0 }
 0xe89   : > { %v2630_v49 = vmax.f32 %v2620_v57, 0.0 }
 0xe8b   : > { %3309 = vmatprep.mubr.f32.mxu0 %v2630_v49 }
 0xe8c   : > { %3310 = vmatmul.mubr.f32.gmra.mrb[18].mxu0 %v2631_v58 }
 0xf50   : > { %v3308_v12 = vpop.f32.mrb[16].mxu0 }
 0xf51   : > { %v2727_v59 = vadd.f32 %v3308_v12, %v2999_v50  ;;  %v2721_v60 = vpop.f32.mrb[17].mxu0 }
 0xf52   : > { %v2722_v1 = vadd.f32 %v2999_v50, %v2721_v60 }
 0xf53   : > { %v2741_v61 = vadd.f32 %v2727_v59, %v2517_v38 }
 0xf54   : > { %v2740_v0 = vadd.f32 %v2722_v1, %v2516_v34 }
 0xf55   : > { %v2749_v62 = vsel %vm528_vm0, %v2741_v61, 0.0 }
 0xf56   : > { %2750 = vadd.xlane.f32.xlu0 %v2749_v62  ;;  %v2746_v63 = vsel %vm528_vm0, %v2740_v0, 0.0 }
 0xf57   : > { %2747 = vadd.xlane.f32.xlu1 %v2746_v63 }
 0xf5f   : > { %v3311_v2 = vpop.f32.mrb[18].mxu0 }
 0xf60   : > { %v2737_v4 = vadd.f32 %v3311_v2, %v2999_v50  ;;  %v2731_v6 = vpop.f32.mrb[19].mxu0 }
 0xf61   : > { %v2732_v44 = vadd.f32 %v2999_v50, %v2731_v6 }
 0xf62   : > { %v2743_v7 = vadd.f32 %v2737_v4, %v2519_v46 }
 0xf63   : > { %v2742_v5 = vadd.f32 %v2732_v44, %v2518_v41  ;;  %v3000_v41 = vld [vmem:[%s4469_s12] ss:$0 sm:$0xff] }
 0xf64   : > { %v2755_v8 = vsel %vm528_vm0, %v2743_v7, 0.0 }
 0xf65   : > { %2756 = vadd.xlane.f32.xlu0 %v2755_v8  ;;  %v2752_v3 = vsel %vm528_vm0, %v2742_v5, 0.0 }
 0xf66   : > { %2753 = vadd.xlane.f32.xlu1 %v2752_v3 }
 0xfe3   : > { %v2751_v9 = vpop.xlane.xlu0 %2750 }
 0xfe4   : > { %v2759_v14 = vmul.f32 0.03125, %v2751_v9  ;;  %v2748_v19 = vpop.xlane.xlu1 %2747 }
 0xfe5   : > { %v2758_v17 = vmul.f32 0.03125, %v2748_v19 }
 0xfe6   : > { %v2763_v13 = vsub.f32 %v2741_v61, %v2759_v14 }
 0xfe7   : > { %v2762_v16 = vsub.f32 %v2740_v0, %v2758_v17 }
 0xfe8   : > { %v2767_v18 = vmul.f32 %v2763_v13, %v2763_v13 }
 0xfe9   : > { %v2766_v21 = vmul.f32 %v2762_v16, %v2762_v16 }
 0xfea   : > { %v2773_v22 = vsel %vm528_vm0, %v2767_v18, 0.0 }
 0xfeb   : > { %2774 = vadd.xlane.f32.xlu0 %v2773_v22  ;;  %v2770_v23 = vsel %vm528_vm0, %v2766_v21, 0.0 }
 0xfec   : > { %2771 = vadd.xlane.f32.xlu1 %v2770_v23 }
 0xff2   : > { %v2757_v15 = vpop.xlane.xlu0 %2756 }
 0xff3   : > { %v2761_v25 = vmul.f32 0.03125, %v2757_v15  ;;  %v2754_v11 = vpop.xlane.xlu1 %2753 }
 0xff4   : > { %v2760_v26 = vmul.f32 0.03125, %v2754_v11 }
 0xff5   : > { %v2765_v10 = vsub.f32 %v2743_v7, %v2761_v25 }
 0xff6   : > { %v2764_v29 = vsub.f32 %v2742_v5, %v2760_v26 }
 0xff7   : > { %v2769_v20 = vmul.f32 %v2765_v10, %v2765_v10 }
 0xff8   : > { %v2768_v30 = vmul.f32 %v2764_v29, %v2764_v29 }
 0xff9   : > { %v2779_v31 = vsel %vm528_vm0, %v2769_v20, 0.0 }
 0xffa   : > { %2780 = vadd.xlane.f32.xlu0 %v2779_v31  ;;  %v2776_v32 = vsel %vm528_vm0, %v2768_v30, 0.0 }
 0xffb   : > { %2777 = vadd.xlane.f32.xlu1 %v2776_v32 }
0x1078   : > { %v2775_v33 = vpop.xlane.xlu0 %2774 }
0x1079   : > { %v2783_v34 = vmul.f32 0.03125, %v2775_v33  ;;  %v2772_v38 = vpop.xlane.xlu1 %2771 }
0x107a   : > { %v2782_v35 = vmul.f32 0.03125, %v2772_v38 }
0x107b   : > { %v2787_v39 = vadd.f32 1e-05, %v2783_v34 }
0x107c   : > { %v2786_v36 = vadd.f32 1e-05, %v2782_v35 }
0x107d   : > { %3664 = vrsqrt.f32 %v2787_v39 }
0x107e   : > { %3666 = vrsqrt.f32 %v2786_v36 }
0x1087   : > { %v3665_v40 = vpop.eup %3664  ;;  %v2781_v42 = vpop.xlane.xlu0 %2780 }
0x1088   : > { %v3667_v43 = vpop.eup %3666  ;;  %v2795_v46 = vmul.f32 %v3665_v40, %v2763_v13  ;;  %v2785_v47 = vmul.f32 0.03125, %v2781_v42  ;;  %v2778_v24 = vpop.xlane.xlu1 %2777 }
0x1089   : > { %v2794_v48 = vmul.f32 %v3667_v43, %v2762_v16  ;;  %v2784_v51 = vmul.f32 0.03125, %v2778_v24 }
0x108a   : > { %v2805_v52 = vmul.f32 %v3000_v41, %v2795_v46  ;;  %v2789_v53 = vadd.f32 1e-05, %v2785_v47 }
0x108b   : > { %v2804_v54 = vmul.f32 %v3000_v41, %v2794_v48  ;;  %v2788_v55 = vadd.f32 1e-05, %v2784_v51 }
0x108c   : > { %v2815_v56 = vadd.f32 %v3001_v45, %v2805_v52  ;;  %3668 = vrsqrt.f32 %v2789_v53 }
0x108d   : > { %v2814_v27 = vadd.f32 %v3001_v45, %v2804_v54  ;;  %3670 = vrsqrt.f32 %v2788_v55 }
0x108e   : > { %2819 = vst.msk [vmem:[%s503_s15 + $0x8] sm:$0xff] %vm528_vm0, %v2815_v56 }
0x108f   : > { %2818 = vst.msk [vmem:[%s503_s15] sm:$0xff] %vm528_vm0, %v2814_v27 }
0x1096   : > { %v3669_v37 = vpop.eup %3668 }
0x1097   : > { %v3671_v28 = vpop.eup %3670  ;;  %v2797_v57 = vmul.f32 %v3669_v37, %v2765_v10 }
0x1098   : > { %v2796_v49 = vmul.f32 %v3671_v28, %v2764_v29 }
0x1099   : > { %v2807_v58 = vmul.f32 %v3000_v41, %v2797_v57 }
0x109a   : > { %v2806_v50 = vmul.f32 %v3000_v41, %v2796_v49 }
0x109b   : > { %v2817_v12 = vadd.f32 %v3001_v45, %v2807_v58 }
0x109c   : > { %v2816_v59 = vadd.f32 %v3001_v45, %v2806_v50 }
0x109d   : > { %2821 = vst.msk [vmem:[%s503_s15 + $0x18] sm:$0xff] %vm528_vm0, %v2817_v12 }
0x109e   : > { %2820 = vst.msk [vmem:[%s503_s15 + $0x10] sm:$0xff] %vm528_vm0, %v2816_v59 }
0x109f   : > { %3719 = shalt.err (!%p3716_p4)
}
0x10a0   : > { %s3720_s15 = scalar_lea.hbm %s4408_s28, 512  ;;  %s3724_s14 = scalar_lea.hbm %s4490_s24, 1024 }
0x10a1   : > { %p3721_p5 = scmp.ne.s32.totalorder %s4408_s28, %s3720_s15  ;;  %p3725_p1 = scmp.lt.u32.totalorder %s4408_s28, %s4490_s24 }
0x10a2   : > { %p3726_p3 = scmp.lt.u32.totalorder %s3724_s14, %s3720_s15  ;;  %p3728_p6 = scmp.lt.u32.totalorder %s3720_s15, %s4408_s28 }
0x10a3   : > { %p3722_p7 = pnand %p3721_p5, %p4491_p12 }
0x10a4   : > { %p3727_p11 = por %p3726_p3, %p3725_p1 }
0x10a5   : > { %p3723_p9 = pneg %p3722_p7 }
0x10a6   : > { %p3729_p13 = por %p3728_p6, %p3727_p11 }
0x10a8   : > { %p3730_p8 = pnand %p3729_p13, %p3723_p9 }
0x10aa   : > { %3733 = shalt.err (!%p3730_p8)
}
0x10ab   : > { %s3793_s21 = smov 128   ;;  %s4492_s19 = scalar_lea.sflag [#allocation4], %s3973_s18 }
0x10ac   : > { %3450 = dma.vmem_to_hbm [thread:$0]  (%p4491_p12), %s4410_s22, 512, %s4408_s28, %s4492_s19, %s3793_s21, %s3793_s21, %s3789_s23  }
0x10ad PF: > { %s4493_s20 = sld [smem:[#allocation8_spill]]  ;;  %p4494_p10 = scmp.ne.s32.totalorder %s4486_s26, 0 }
0x10ae   : > { %p4495_p0 = scmp.ge.s32.totalorder %s3772_s16, 2 }
0x10b0   : > { %p3457_p2 = pnand %p4495_p0, %p4494_p10 }
0x10b3   : > { %s2852_s17 = sand.u32 1, %s4493_s20  }
0x10b4   : > { %s2853_s15 = scalar_lea.sflag [#allocation4], %s2852_s17 }
0x10b5   : > { %3755 = dma.done.wait (!%p3457_p2), %s2853_s15, 512  }
0x10b6   : > { %3757 = vsyncadd (!%p3457_p2), %s2853_s15, 4294966784  ;;  %s4496_s16 = sld [smem:[#allocation10_spill]]  ;;  %s4497_s25 = sld [smem:[#allocation9_spill]] }
0x10b7   : > { %s4498_s15 = sld [smem:[#allocation11_spill]]  ;;  %s4499_s29 = smov %s3764_s30 }
0x10bc   : > { %p27_p4 = scmp.ge.s32.totalorder %s4496_s16, 4   ;;  %s4500_s30 = smov %s4497_s25 }
0x10be   :  { %29 = sbr.rel (!%p27_p4) target bundleno = 7 (0x7), region = 124 }
0x10c5   :  { %2858 = vsyncpa [#allocation3], 1 }
0x10c6   :  { %2860 = vsyncpa [#allocation3 + $0x1], 1 }
0x10c7   :  { %2861 = vsyncpa [#allocation4], 1 }
0x10c8   :  { %2863 = vsyncpa [#allocation4 + $0x1], 1 }

</bundles_post_ra>
